<compile_context>
chip_gen: v7x
topology: tpu7x:2x2x1
jax: 0.10.0
libtpu: 0.0.40
codegen_flags: <defaults>
</compile_context>

<pallas_src>
import functools
import math

import jax
import jax.numpy as jnp
from jax.experimental import pallas as pl
from jax.experimental.pallas import tpu as pltpu

LANE = 128      # lane width (last dim)
SUBLANE = 8     # sublane width (second-to-last dim, f32)


def _round_up(x, m):
    return (x + m - 1) // m * m


# ----------------------------------------------------------------------------
# Host-side parameter preparation: transpose to (Din, 4H) packed-gate layout
# (NO per-gate padding), cast to the matmul compute dtype.
# ----------------------------------------------------------------------------
def _prep_params(params, P, compute_dtype):
    H4 = params[0][0].shape[0]                 # 4*H

    # Layer 0 input weight: (4H, Din) -> (Din, 4H) -> pad rows Din -> P.
    w_ih0 = params[0][0]
    d_in = w_ih0.shape[1]
    wih0 = jnp.pad(jnp.transpose(w_ih0), ((0, P - d_in), (0, 0)))    # (P, 4H)

    wihr, whh, bias = [], [], []
    for li, (w_ih, w_hh, b_ih, b_hh) in enumerate(params):
        if li > 0:
            wihr.append(jnp.transpose(w_ih))                         # (H, 4H)
        whh.append(jnp.transpose(w_hh))                              # (H, 4H)
        bias.append((b_ih + b_hh).reshape(1, H4))                    # (1, 4H)
    if not wihr:                       # num_layers == 1: dummy, never read
        wihr.append(jnp.zeros_like(whh[0]))

    return (wih0.astype(compute_dtype),
            jnp.stack(wihr).astype(compute_dtype),
            jnp.stack(whh).astype(compute_dtype),
            jnp.stack(bias).astype(jnp.float32))


# ----------------------------------------------------------------------------
# Fused kernel: all layers, full sequence, single invocation
# ----------------------------------------------------------------------------
def fused_lstm_kernel(x_ref, wih0_ref, wihr_ref, whh_ref, b_ref, out_ref,
                      seq_ref, xg_ref, *, T, Bp, H, num_layers):
    """
    x_ref    : (T*Bp, P)       layer-0 inputs, t-major rows (row = t*Bp + b)
    wih0_ref : (P,  4H)        layer-0 input weights (pre-transposed)
    wihr_ref : (L-1 or 1, H, 4H) input weights for layers > 0
    whh_ref  : (L, H, 4H)      recurrent weights (pre-transposed, packed gates)
    b_ref    : (L, 1, 4H)      combined bias (b_ih + b_hh), f32
    out_ref  : (Bp, H)         last-timestep hidden state of the top layer
    seq_ref  : VMEM (T*Bp, H)  inter-layer hidden-state sequence (f32 scratch)
    xg_ref   : VMEM (T*Bp, 4H) whole-sequence pre-activations (f32 scratch)
    """
    cdt = whh_ref.dtype                               # matmul operand dtype

    for layer in range(num_layers):
        last = layer == num_layers - 1

        # Input-to-gate matmul for ALL timesteps at once (one MXU pass per
        # layer), bias added once -- outside the recurrence.  Operands in the
        # compute dtype (bf16 by default), accumulation in f32.
        if layer == 0:
            xg = jnp.dot(x_ref[...], wih0_ref[...],
                         preferred_element_type=jnp.float32)
        else:
            xg = jnp.dot(seq_ref[...].astype(cdt), wihr_ref[layer - 1],
                         preferred_element_type=jnp.float32)
        xg_ref[...] = xg + b_ref[layer]

        # Recurrent weights read ONCE per layer: the RHS of the per-timestep
        # matmul is loop-invariant (a single <=32x128 tile now that gates are
        # packed), so it can be latched across the unrolled t-loop.
        w_hh = whh_ref[layer]                                   # (H, 4H)

        h = jnp.zeros((Bp, H), jnp.float32)
        c = jnp.zeros((Bp, H), jnp.float32)

        # T is small and static -> trace-time unroll of the recurrence.
        for t in range(T):
            gates = xg_ref[pl.ds(t * Bp, Bp), :] + jnp.dot(
                h.astype(cdt), w_hh, preferred_element_type=jnp.float32)
            # Packed-gate extraction: each slice is a lane-offset window of a
            # single 128-lane vreg (one XLU rotate); elementwise math in f32.
            i = jax.nn.sigmoid(gates[:, 0 * H:1 * H])
            f = jax.nn.sigmoid(gates[:, 1 * H:2 * H])
            g = jnp.tanh(gates[:, 2 * H:3 * H])
            o = jax.nn.sigmoid(gates[:, 3 * H:4 * H])
            c = f * c + i * g
            h = o * jnp.tanh(c)
            if not last:
                # Tile-aligned f32 store of this timestep's hidden state into
                # the VMEM sequence buffer (input of the next layer).
                seq_ref[pl.ds(t * Bp, Bp), :] = h

        if last:
            # Only HBM output: the final hidden state of the top layer.
            out_ref[...] = h.astype(out_ref.dtype)


# ----------------------------------------------------------------------------
# Wrapper (equivalent of LSTM.forward)
# ----------------------------------------------------------------------------
def lstm_forward(x_ncl, params, hidden_size, compute_dtype=jnp.bfloat16):
    """x_ncl: (B, input_size, seq_len); params: list of (w_ih, w_hh, b_ih, b_hh)."""
    B, input_size, T = x_ncl.shape
    H = hidden_size
    L = len(params)

    P = _round_up(input_size, LANE)    # padded layer-0 feature width
    Bp = _round_up(B, SUBLANE)         # padded batch (sublane width)

    wih0, wihr, whh, b = _prep_params(params, P, compute_dtype)

    # (B, Din, T) -> (T, B, Din) -> pad batch/features -> (T*Bp, P) t-major.
    x = jnp.transpose(x_ncl, (2, 0, 1)).astype(jnp.float32)
    x = jnp.pad(x, ((0, 0), (0, Bp - B), (0, P - input_size)))
    x2d = x.reshape(T * Bp, P).astype(compute_dtype)

    kernel = functools.partial(fused_lstm_kernel,
                               T=T, Bp=Bp, H=H, num_layers=L)
    vmem = pl.BlockSpec(memory_space=pltpu.MemorySpace.VMEM)
    out_padded = pl.pallas_call(
        kernel,
        out_shape=jax.ShapeDtypeStruct((Bp, H), jnp.float32),
        in_specs=[vmem] * 5,
        out_specs=vmem,
        scratch_shapes=[
            pltpu.VMEM((T * Bp, H), jnp.float32),        # inter-layer sequence
            pltpu.VMEM((T * Bp, 4 * H), jnp.float32),    # pre-activations
        ],
        compiler_params=pltpu.CompilerParams(
            vmem_limit_bytes=32 * 1024 * 1024),
    )(x2d, wih0, wihr, whh, b)

    return out_padded[:B, :]


# ----------------------------------------------------------------------------
# Init + pure-JAX reference
# ----------------------------------------------------------------------------
def init_lstm_params(key, input_size, hidden_size, num_layers):
    """PyTorch-style default init: U(-1/sqrt(H), 1/sqrt(H))."""
    k = 1.0 / math.sqrt(hidden_size)
    params = []
    for layer in range(num_layers):
        d_in = input_size if layer == 0 else hidden_size
        key, k1, k2, k3, k4 = jax.random.split(key, 5)
        w_ih = jax.random.uniform(k1, (4 * hidden_size, d_in), jnp.float32, -k, k)
        w_hh = jax.random.uniform(k2, (4 * hidden_size, hidden_size), jnp.float32, -k, k)
        b_ih = jax.random.uniform(k3, (4 * hidden_size,), jnp.float32, -k, k)
        b_hh = jax.random.uniform(k4, (4 * hidden_size,), jnp.float32, -k, k)
        params.append((w_ih, w_hh, b_ih, b_hh))
    return params


def lstm_forward_ref(x_ncl, params):
    """Pure-JAX reference for correctness checking."""
    x = jnp.transpose(x_ncl, (0, 2, 1))
    seq = x
    for (w_ih, w_hh, b_ih, b_hh) in params:
        B, T, _ = seq.shape
        H = w_hh.shape[1]
        h = jnp.zeros((B, H), jnp.float32)
        c = jnp.zeros((B, H), jnp.float32)
        outs = []
        for t in range(T):
            gates = seq[:, t, :] @ w_ih.T + h @ w_hh.T + b_ih + b_hh
            i = jax.nn.sigmoid(gates[:, 0 * H:1 * H])
            f = jax.nn.sigmoid(gates[:, 1 * H:2 * H])
            g = jnp.tanh(gates[:, 2 * H:3 * H])
            o = jax.nn.sigmoid(gates[:, 3 * H:4 * H])
            c = f * c + i * g
            h = o * jnp.tanh(c)
            outs.append(h)
        seq = jnp.stack(outs, axis=1)
    return seq[:, -1, :]


if __name__ == "__main__":
    INPUT_SIZE = 4
    HIDDEN_SIZE = 32
    NUM_LAYERS = 2
    BATCH = 2
    SEQ_LEN = 8

    key = jax.random.PRNGKey(0)
    key, xkey = jax.random.split(key)
    # x in PyTorch layout (B, input_size, seq_len), as fed to LSTM.forward
    x = jax.random.normal(xkey, (BATCH, INPUT_SIZE, SEQ_LEN), jnp.float32)
    params = init_lstm_params(key, INPUT_SIZE, HIDDEN_SIZE, NUM_LAYERS)

    ref = jax.block_until_ready(lstm_forward_ref(x, params))

    # Strict-parity path: f32 matmul operands.
    fwd_f32 = jax.jit(functools.partial(
        lstm_forward, hidden_size=HIDDEN_SIZE, compute_dtype=jnp.float32))
    out_f32 = jax.block_until_ready(fwd_f32(x, params))
    assert out_f32.shape == (BATCH, HIDDEN_SIZE)
    assert jnp.allclose(out_f32, ref, atol=1e-4, rtol=1e-4), (
        float(jnp.max(jnp.abs(out_f32 - ref))))

    # Default fast path: bf16 matmul operands, f32 accumulation / elementwise.
    fwd = jax.jit(functools.partial(lstm_forward, hidden_size=HIDDEN_SIZE))
    out = jax.block_until_ready(fwd(x, params))
    assert out.shape == (BATCH, HIDDEN_SIZE)
    assert jnp.allclose(out, ref, atol=5e-2, rtol=5e-2), (
        float(jnp.max(jnp.abs(out - ref))))

    print("KERNEL_OK")
</pallas_src>

<mosaic_0001>
module attributes {stable_mosaic.version = 11 : i64} {
  func.func @fused_lstm_kernel(%arg0: memref<64x128xf32, #tpu.memory_space<vmem>>, %arg1: memref<128x128xf32, #tpu.memory_space<vmem>>, %arg2: memref<1x32x128xf32, #tpu.memory_space<vmem>>, %arg3: memref<2x32x128xf32, #tpu.memory_space<vmem>>, %arg4: memref<2x1x128xf32, #tpu.memory_space<vmem>>, %arg5: memref<8x32xf32, #tpu.memory_space<vmem>>, %arg6: memref<64x32xf32, #tpu.memory_space<vmem>>, %arg7: memref<64x128xf32, #tpu.memory_space<vmem>>) attributes {dimension_semantics = [], scalar_prefetch = 0 : i64, scratch_operands = 2 : i64, tpu.core_type = #tpu.core_type<tc>} {
    %c0 = arith.constant 0 : index
    %c0_0 = arith.constant 0 : index
    %0 = vector.load %arg0[%c0, %c0_0] : memref<64x128xf32, #tpu.memory_space<vmem>>, vector<64x128xf32>
    %c0_1 = arith.constant 0 : index
    %c0_2 = arith.constant 0 : index
    %1 = vector.load %arg1[%c0_1, %c0_2] : memref<128x128xf32, #tpu.memory_space<vmem>>, vector<128x128xf32>
    %cst = arith.constant dense<0.000000e+00> : vector<64x128xf32>
    %2 = tpu.matmul %0, %1, %cst {dimension_numbers = #tpu.dot_dimension_numbers<[1], [0], [0], [1], [0, 0, 1, 1], [], []>} : vector<64x128xf32>, vector<128x128xf32>, vector<64x128xf32> -> vector<64x128xf32>
    %c0_3 = arith.constant 0 : index
    %c0_4 = arith.constant 0 : index
    %c0_5 = arith.constant 0 : index
    %3 = vector.load %arg4[%c0_3, %c0_4, %c0_5] : memref<2x1x128xf32, #tpu.memory_space<vmem>>, vector<1x1x128xf32>
    %4 = vector.shape_cast %3 : vector<1x1x128xf32> to vector<1x128xf32>
    %5 = vector.broadcast %4 : vector<1x128xf32> to vector<64x128xf32>
    %6 = arith.addf %2, %5 : vector<64x128xf32>
    %c0_6 = arith.constant 0 : index
    %c0_7 = arith.constant 0 : index
    %7 = vector.load %arg7[%c0_6, %c0_7] : memref<64x128xf32, #tpu.memory_space<vmem>>, vector<64x128xf32>
    tpu.vector_store %arg7[%c0_6, %c0_7], %6 {strides = array<i32>} : memref<64x128xf32, #tpu.memory_space<vmem>>, vector<64x128xf32>,
    %c0_8 = arith.constant 0 : index
    %c0_9 = arith.constant 0 : index
    %c0_10 = arith.constant 0 : index
    %8 = vector.load %arg3[%c0_8, %c0_9, %c0_10] : memref<2x32x128xf32, #tpu.memory_space<vmem>>, vector<1x32x128xf32>
    %9 = vector.shape_cast %8 : vector<1x32x128xf32> to vector<32x128xf32>
    %cst_11 = arith.constant 0.000000e+00 : f32
    %10 = vector.broadcast %cst_11 : f32 to vector<8x32xf32>
    %cst_12 = arith.constant 0.000000e+00 : f32
    %11 = vector.broadcast %cst_12 : f32 to vector<8x32xf32>
    %c0_13 = arith.constant 0 : index
    %c0_14 = arith.constant 0 : index
    %12 = vector.load %arg7[%c0_13, %c0_14] : memref<64x128xf32, #tpu.memory_space<vmem>>, vector<8x128xf32>
    %cst_15 = arith.constant dense<0.000000e+00> : vector<8x128xf32>
    %13 = tpu.matmul %10, %9, %cst_15 {dimension_numbers = #tpu.dot_dimension_numbers<[1], [0], [0], [1], [0, 0, 1, 1], [], []>} : vector<8x32xf32>, vector<32x128xf32>, vector<8x128xf32> -> vector<8x128xf32>
    %14 = arith.addf %12, %13 : vector<8x128xf32>
    %15 = vector.extract_strided_slice %14 {offsets = [0, 0], sizes = [8, 32], strides = [1, 1]} : vector<8x128xf32> to vector<8x32xf32>
    %16 = arith.negf %15 : vector<8x32xf32>
    %17 = math.exp %16 : vector<8x32xf32>
    %cst_16 = arith.constant 1.000000e+00 : f32
    %18 = vector.broadcast %cst_16 : f32 to vector<8x32xf32>
    %19 = arith.addf %18, %17 : vector<8x32xf32>
    %20 = arith.divf %18, %19 : vector<8x32xf32>
    %21 = vector.extract_strided_slice %14 {offsets = [0, 32], sizes = [8, 32], strides = [1, 1]} : vector<8x128xf32> to vector<8x32xf32>
    %22 = arith.negf %21 : vector<8x32xf32>
    %23 = math.exp %22 : vector<8x32xf32>
    %cst_17 = arith.constant 1.000000e+00 : f32
    %24 = vector.broadcast %cst_17 : f32 to vector<8x32xf32>
    %25 = arith.addf %24, %23 : vector<8x32xf32>
    %26 = arith.divf %24, %25 : vector<8x32xf32>
    %27 = vector.extract_strided_slice %14 {offsets = [0, 64], sizes = [8, 32], strides = [1, 1]} : vector<8x128xf32> to vector<8x32xf32>
    %28 = math.tanh %27 : vector<8x32xf32>
    %29 = vector.extract_strided_slice %14 {offsets = [0, 96], sizes = [8, 32], strides = [1, 1]} : vector<8x128xf32> to vector<8x32xf32>
    %30 = arith.negf %29 : vector<8x32xf32>
    %31 = math.exp %30 : vector<8x32xf32>
    %cst_18 = arith.constant 1.000000e+00 : f32
    %32 = vector.broadcast %cst_18 : f32 to vector<8x32xf32>
    %33 = arith.addf %32, %31 : vector<8x32xf32>
    %34 = arith.divf %32, %33 : vector<8x32xf32>
    %35 = arith.mulf %26, %11 : vector<8x32xf32>
    %36 = arith.mulf %20, %28 : vector<8x32xf32>
    %37 = arith.addf %35, %36 : vector<8x32xf32>
    %38 = math.tanh %37 : vector<8x32xf32>
    %39 = arith.mulf %34, %38 : vector<8x32xf32>
    %c0_19 = arith.constant 0 : index
    %c0_20 = arith.constant 0 : index
    %40 = vector.load %arg6[%c0_19, %c0_20] : memref<64x32xf32, #tpu.memory_space<vmem>>, vector<8x32xf32>
    tpu.vector_store %arg6[%c0_19, %c0_20], %39 {strides = array<i32>} : memref<64x32xf32, #tpu.memory_space<vmem>>, vector<8x32xf32>,
    %c8 = arith.constant 8 : index
    %c0_21 = arith.constant 0 : index
    %41 = vector.load %arg7[%c8, %c0_21] : memref<64x128xf32, #tpu.memory_space<vmem>>, vector<8x128xf32>
    %cst_22 = arith.constant dense<0.000000e+00> : vector<8x128xf32>
    %42 = tpu.matmul %39, %9, %cst_22 {dimension_numbers = #tpu.dot_dimension_numbers<[1], [0], [0], [1], [0, 0, 1, 1], [], []>} : vector<8x32xf32>, vector<32x128xf32>, vector<8x128xf32> -> vector<8x128xf32>
    %43 = arith.addf %41, %42 : vector<8x128xf32>
    %44 = vector.extract_strided_slice %43 {offsets = [0, 0], sizes = [8, 32], strides = [1, 1]} : vector<8x128xf32> to vector<8x32xf32>
    %45 = arith.negf %44 : vector<8x32xf32>
    %46 = math.exp %45 : vector<8x32xf32>
    %cst_23 = arith.constant 1.000000e+00 : f32
    %47 = vector.broadcast %cst_23 : f32 to vector<8x32xf32>
    %48 = arith.addf %47, %46 : vector<8x32xf32>
    %49 = arith.divf %47, %48 : vector<8x32xf32>
    %50 = vector.extract_strided_slice %43 {offsets = [0, 32], sizes = [8, 32], strides = [1, 1]} : vector<8x128xf32> to vector<8x32xf32>
    %51 = arith.negf %50 : vector<8x32xf32>
    %52 = math.exp %51 : vector<8x32xf32>
    %cst_24 = arith.constant 1.000000e+00 : f32
    %53 = vector.broadcast %cst_24 : f32 to vector<8x32xf32>
    %54 = arith.addf %53, %52 : vector<8x32xf32>
    %55 = arith.divf %53, %54 : vector<8x32xf32>
    %56 = vector.extract_strided_slice %43 {offsets = [0, 64], sizes = [8, 32], strides = [1, 1]} : vector<8x128xf32> to vector<8x32xf32>
    %57 = math.tanh %56 : vector<8x32xf32>
    %58 = vector.extract_strided_slice %43 {offsets = [0, 96], sizes = [8, 32], strides = [1, 1]} : vector<8x128xf32> to vector<8x32xf32>
    %59 = arith.negf %58 : vector<8x32xf32>
    %60 = math.exp %59 : vector<8x32xf32>
    %cst_25 = arith.constant 1.000000e+00 : f32
    %61 = vector.broadcast %cst_25 : f32 to vector<8x32xf32>
    %62 = arith.addf %61, %60 : vector<8x32xf32>
    %63 = arith.divf %61, %62 : vector<8x32xf32>
    %64 = arith.mulf %55, %37 : vector<8x32xf32>
    %65 = arith.mulf %49, %57 : vector<8x32xf32>
    %66 = arith.addf %64, %65 : vector<8x32xf32>
    %67 = math.tanh %66 : vector<8x32xf32>
    %68 = arith.mulf %63, %67 : vector<8x32xf32>
    %c8_26 = arith.constant 8 : index
    %c0_27 = arith.constant 0 : index
    %69 = vector.load %arg6[%c8_26, %c0_27] : memref<64x32xf32, #tpu.memory_space<vmem>>, vector<8x32xf32>
    tpu.vector_store %arg6[%c8_26, %c0_27], %68 {strides = array<i32>} : memref<64x32xf32, #tpu.memory_space<vmem>>, vector<8x32xf32>,
    %c16 = arith.constant 16 : index
    %c0_28 = arith.constant 0 : index
    %70 = vector.load %arg7[%c16, %c0_28] : memref<64x128xf32, #tpu.memory_space<vmem>>, vector<8x128xf32>
    %cst_29 = arith.constant dense<0.000000e+00> : vector<8x128xf32>
    %71 = tpu.matmul %68, %9, %cst_29 {dimension_numbers = #tpu.dot_dimension_numbers<[1], [0], [0], [1], [0, 0, 1, 1], [], []>} : vector<8x32xf32>, vector<32x128xf32>, vector<8x128xf32> -> vector<8x128xf32>
    %72 = arith.addf %70, %71 : vector<8x128xf32>
    %73 = vector.extract_strided_slice %72 {offsets = [0, 0], sizes = [8, 32], strides = [1, 1]} : vector<8x128xf32> to vector<8x32xf32>
    %74 = arith.negf %73 : vector<8x32xf32>
    %75 = math.exp %74 : vector<8x32xf32>
    %cst_30 = arith.constant 1.000000e+00 : f32
    %76 = vector.broadcast %cst_30 : f32 to vector<8x32xf32>
    %77 = arith.addf %76, %75 : vector<8x32xf32>
    %78 = arith.divf %76, %77 : vector<8x32xf32>
    %79 = vector.extract_strided_slice %72 {offsets = [0, 32], sizes = [8, 32], strides = [1, 1]} : vector<8x128xf32> to vector<8x32xf32>
    %80 = arith.negf %79 : vector<8x32xf32>
    %81 = math.exp %80 : vector<8x32xf32>
    %cst_31 = arith.constant 1.000000e+00 : f32
    %82 = vector.broadcast %cst_31 : f32 to vector<8x32xf32>
    %83 = arith.addf %82, %81 : vector<8x32xf32>
    %84 = arith.divf %82, %83 : vector<8x32xf32>
    %85 = vector.extract_strided_slice %72 {offsets = [0, 64], sizes = [8, 32], strides = [1, 1]} : vector<8x128xf32> to vector<8x32xf32>
    %86 = math.tanh %85 : vector<8x32xf32>
    %87 = vector.extract_strided_slice %72 {offsets = [0, 96], sizes = [8, 32], strides = [1, 1]} : vector<8x128xf32> to vector<8x32xf32>
    %88 = arith.negf %87 : vector<8x32xf32>
    %89 = math.exp %88 : vector<8x32xf32>
    %cst_32 = arith.constant 1.000000e+00 : f32
    %90 = vector.broadcast %cst_32 : f32 to vector<8x32xf32>
    %91 = arith.addf %90, %89 : vector<8x32xf32>
    %92 = arith.divf %90, %91 : vector<8x32xf32>
    %93 = arith.mulf %84, %66 : vector<8x32xf32>
    %94 = arith.mulf %78, %86 : vector<8x32xf32>
    %95 = arith.addf %93, %94 : vector<8x32xf32>
    %96 = math.tanh %95 : vector<8x32xf32>
    %97 = arith.mulf %92, %96 : vector<8x32xf32>
    %c16_33 = arith.constant 16 : index
    %c0_34 = arith.constant 0 : index
    %98 = vector.load %arg6[%c16_33, %c0_34] : memref<64x32xf32, #tpu.memory_space<vmem>>, vector<8x32xf32>
    tpu.vector_store %arg6[%c16_33, %c0_34], %97 {strides = array<i32>} : memref<64x32xf32, #tpu.memory_space<vmem>>, vector<8x32xf32>,
    %c24 = arith.constant 24 : index
    %c0_35 = arith.constant 0 : index
    %99 = vector.load %arg7[%c24, %c0_35] : memref<64x128xf32, #tpu.memory_space<vmem>>, vector<8x128xf32>
    %cst_36 = arith.constant dense<0.000000e+00> : vector<8x128xf32>
    %100 = tpu.matmul %97, %9, %cst_36 {dimension_numbers = #tpu.dot_dimension_numbers<[1], [0], [0], [1], [0, 0, 1, 1], [], []>} : vector<8x32xf32>, vector<32x128xf32>, vector<8x128xf32> -> vector<8x128xf32>
    %101 = arith.addf %99, %100 : vector<8x128xf32>
    %102 = vector.extract_strided_slice %101 {offsets = [0, 0], sizes = [8, 32], strides = [1, 1]} : vector<8x128xf32> to vector<8x32xf32>
    %103 = arith.negf %102 : vector<8x32xf32>
    %104 = math.exp %103 : vector<8x32xf32>
    %cst_37 = arith.constant 1.000000e+00 : f32
    %105 = vector.broadcast %cst_37 : f32 to vector<8x32xf32>
    %106 = arith.addf %105, %104 : vector<8x32xf32>
    %107 = arith.divf %105, %106 : vector<8x32xf32>
    %108 = vector.extract_strided_slice %101 {offsets = [0, 32], sizes = [8, 32], strides = [1, 1]} : vector<8x128xf32> to vector<8x32xf32>
    %109 = arith.negf %108 : vector<8x32xf32>
    %110 = math.exp %109 : vector<8x32xf32>
    %cst_38 = arith.constant 1.000000e+00 : f32
    %111 = vector.broadcast %cst_38 : f32 to vector<8x32xf32>
    %112 = arith.addf %111, %110 : vector<8x32xf32>
    %113 = arith.divf %111, %112 : vector<8x32xf32>
    %114 = vector.extract_strided_slice %101 {offsets = [0, 64], sizes = [8, 32], strides = [1, 1]} : vector<8x128xf32> to vector<8x32xf32>
    %115 = math.tanh %114 : vector<8x32xf32>
    %116 = vector.extract_strided_slice %101 {offsets = [0, 96], sizes = [8, 32], strides = [1, 1]} : vector<8x128xf32> to vector<8x32xf32>
    %117 = arith.negf %116 : vector<8x32xf32>
    %118 = math.exp %117 : vector<8x32xf32>
    %cst_39 = arith.constant 1.000000e+00 : f32
    %119 = vector.broadcast %cst_39 : f32 to vector<8x32xf32>
    %120 = arith.addf %119, %118 : vector<8x32xf32>
    %121 = arith.divf %119, %120 : vector<8x32xf32>
    %122 = arith.mulf %113, %95 : vector<8x32xf32>
    %123 = arith.mulf %107, %115 : vector<8x32xf32>
    %124 = arith.addf %122, %123 : vector<8x32xf32>
    %125 = math.tanh %124 : vector<8x32xf32>
    %126 = arith.mulf %121, %125 : vector<8x32xf32>
    %c24_40 = arith.constant 24 : index
    %c0_41 = arith.constant 0 : index
    %127 = vector.load %arg6[%c24_40, %c0_41] : memref<64x32xf32, #tpu.memory_space<vmem>>, vector<8x32xf32>
    tpu.vector_store %arg6[%c24_40, %c0_41], %126 {strides = array<i32>} : memref<64x32xf32, #tpu.memory_space<vmem>>, vector<8x32xf32>,
    %c32 = arith.constant 32 : index
    %c0_42 = arith.constant 0 : index
    %128 = vector.load %arg7[%c32, %c0_42] : memref<64x128xf32, #tpu.memory_space<vmem>>, vector<8x128xf32>
    %cst_43 = arith.constant dense<0.000000e+00> : vector<8x128xf32>
    %129 = tpu.matmul %126, %9, %cst_43 {dimension_numbers = #tpu.dot_dimension_numbers<[1], [0], [0], [1], [0, 0, 1, 1], [], []>} : vector<8x32xf32>, vector<32x128xf32>, vector<8x128xf32> -> vector<8x128xf32>
    %130 = arith.addf %128, %129 : vector<8x128xf32>
    %131 = vector.extract_strided_slice %130 {offsets = [0, 0], sizes = [8, 32], strides = [1, 1]} : vector<8x128xf32> to vector<8x32xf32>
    %132 = arith.negf %131 : vector<8x32xf32>
    %133 = math.exp %132 : vector<8x32xf32>
    %cst_44 = arith.constant 1.000000e+00 : f32
    %134 = vector.broadcast %cst_44 : f32 to vector<8x32xf32>
    %135 = arith.addf %134, %133 : vector<8x32xf32>
    %136 = arith.divf %134, %135 : vector<8x32xf32>
    %137 = vector.extract_strided_slice %130 {offsets = [0, 32], sizes = [8, 32], strides = [1, 1]} : vector<8x128xf32> to vector<8x32xf32>
    %138 = arith.negf %137 : vector<8x32xf32>
    %139 = math.exp %138 : vector<8x32xf32>
    %cst_45 = arith.constant 1.000000e+00 : f32
    %140 = vector.broadcast %cst_45 : f32 to vector<8x32xf32>
    %141 = arith.addf %140, %139 : vector<8x32xf32>
    %142 = arith.divf %140, %141 : vector<8x32xf32>
    %143 = vector.extract_strided_slice %130 {offsets = [0, 64], sizes = [8, 32], strides = [1, 1]} : vector<8x128xf32> to vector<8x32xf32>
    %144 = math.tanh %143 : vector<8x32xf32>
    %145 = vector.extract_strided_slice %130 {offsets = [0, 96], sizes = [8, 32], strides = [1, 1]} : vector<8x128xf32> to vector<8x32xf32>
    %146 = arith.negf %145 : vector<8x32xf32>
    %147 = math.exp %146 : vector<8x32xf32>
    %cst_46 = arith.constant 1.000000e+00 : f32
    %148 = vector.broadcast %cst_46 : f32 to vector<8x32xf32>
    %149 = arith.addf %148, %147 : vector<8x32xf32>
    %150 = arith.divf %148, %149 : vector<8x32xf32>
    %151 = arith.mulf %142, %124 : vector<8x32xf32>
    %152 = arith.mulf %136, %144 : vector<8x32xf32>
    %153 = arith.addf %151, %152 : vector<8x32xf32>
    %154 = math.tanh %153 : vector<8x32xf32>
    %155 = arith.mulf %150, %154 : vector<8x32xf32>
    %c32_47 = arith.constant 32 : index
    %c0_48 = arith.constant 0 : index
    %156 = vector.load %arg6[%c32_47, %c0_48] : memref<64x32xf32, #tpu.memory_space<vmem>>, vector<8x32xf32>
    tpu.vector_store %arg6[%c32_47, %c0_48], %155 {strides = array<i32>} : memref<64x32xf32, #tpu.memory_space<vmem>>, vector<8x32xf32>,
    %c40 = arith.constant 40 : index
    %c0_49 = arith.constant 0 : index
    %157 = vector.load %arg7[%c40, %c0_49] : memref<64x128xf32, #tpu.memory_space<vmem>>, vector<8x128xf32>
    %cst_50 = arith.constant dense<0.000000e+00> : vector<8x128xf32>
    %158 = tpu.matmul %155, %9, %cst_50 {dimension_numbers = #tpu.dot_dimension_numbers<[1], [0], [0], [1], [0, 0, 1, 1], [], []>} : vector<8x32xf32>, vector<32x128xf32>, vector<8x128xf32> -> vector<8x128xf32>
    %159 = arith.addf %157, %158 : vector<8x128xf32>
    %160 = vector.extract_strided_slice %159 {offsets = [0, 0], sizes = [8, 32], strides = [1, 1]} : vector<8x128xf32> to vector<8x32xf32>
    %161 = arith.negf %160 : vector<8x32xf32>
    %162 = math.exp %161 : vector<8x32xf32>
    %cst_51 = arith.constant 1.000000e+00 : f32
    %163 = vector.broadcast %cst_51 : f32 to vector<8x32xf32>
    %164 = arith.addf %163, %162 : vector<8x32xf32>
    %165 = arith.divf %163, %164 : vector<8x32xf32>
    %166 = vector.extract_strided_slice %159 {offsets = [0, 32], sizes = [8, 32], strides = [1, 1]} : vector<8x128xf32> to vector<8x32xf32>
    %167 = arith.negf %166 : vector<8x32xf32>
    %168 = math.exp %167 : vector<8x32xf32>
    %cst_52 = arith.constant 1.000000e+00 : f32
    %169 = vector.broadcast %cst_52 : f32 to vector<8x32xf32>
    %170 = arith.addf %169, %168 : vector<8x32xf32>
    %171 = arith.divf %169, %170 : vector<8x32xf32>
    %172 = vector.extract_strided_slice %159 {offsets = [0, 64], sizes = [8, 32], strides = [1, 1]} : vector<8x128xf32> to vector<8x32xf32>
    %173 = math.tanh %172 : vector<8x32xf32>
    %174 = vector.extract_strided_slice %159 {offsets = [0, 96], sizes = [8, 32], strides = [1, 1]} : vector<8x128xf32> to vector<8x32xf32>
    %175 = arith.negf %174 : vector<8x32xf32>
    %176 = math.exp %175 : vector<8x32xf32>
    %cst_53 = arith.constant 1.000000e+00 : f32
    %177 = vector.broadcast %cst_53 : f32 to vector<8x32xf32>
    %178 = arith.addf %177, %176 : vector<8x32xf32>
    %179 = arith.divf %177, %178 : vector<8x32xf32>
    %180 = arith.mulf %171, %153 : vector<8x32xf32>
    %181 = arith.mulf %165, %173 : vector<8x32xf32>
    %182 = arith.addf %180, %181 : vector<8x32xf32>
    %183 = math.tanh %182 : vector<8x32xf32>
    %184 = arith.mulf %179, %183 : vector<8x32xf32>
    %c40_54 = arith.constant 40 : index
    %c0_55 = arith.constant 0 : index
    %185 = vector.load %arg6[%c40_54, %c0_55] : memref<64x32xf32, #tpu.memory_space<vmem>>, vector<8x32xf32>
    tpu.vector_store %arg6[%c40_54, %c0_55], %184 {strides = array<i32>} : memref<64x32xf32, #tpu.memory_space<vmem>>, vector<8x32xf32>,
    %c48 = arith.constant 48 : index
    %c0_56 = arith.constant 0 : index
    %186 = vector.load %arg7[%c48, %c0_56] : memref<64x128xf32, #tpu.memory_space<vmem>>, vector<8x128xf32>
    %cst_57 = arith.constant dense<0.000000e+00> : vector<8x128xf32>
    %187 = tpu.matmul %184, %9, %cst_57 {dimension_numbers = #tpu.dot_dimension_numbers<[1], [0], [0], [1], [0, 0, 1, 1], [], []>} : vector<8x32xf32>, vector<32x128xf32>, vector<8x128xf32> -> vector<8x128xf32>
    %188 = arith.addf %186, %187 : vector<8x128xf32>
    %189 = vector.extract_strided_slice %188 {offsets = [0, 0], sizes = [8, 32], strides = [1, 1]} : vector<8x128xf32> to vector<8x32xf32>
    %190 = arith.negf %189 : vector<8x32xf32>
    %191 = math.exp %190 : vector<8x32xf32>
    %cst_58 = arith.constant 1.000000e+00 : f32
    %192 = vector.broadcast %cst_58 : f32 to vector<8x32xf32>
    %193 = arith.addf %192, %191 : vector<8x32xf32>
    %194 = arith.divf %192, %193 : vector<8x32xf32>
    %195 = vector.extract_strided_slice %188 {offsets = [0, 32], sizes = [8, 32], strides = [1, 1]} : vector<8x128xf32> to vector<8x32xf32>
    %196 = arith.negf %195 : vector<8x32xf32>
    %197 = math.exp %196 : vector<8x32xf32>
    %cst_59 = arith.constant 1.000000e+00 : f32
    %198 = vector.broadcast %cst_59 : f32 to vector<8x32xf32>
    %199 = arith.addf %198, %197 : vector<8x32xf32>
    %200 = arith.divf %198, %199 : vector<8x32xf32>
    %201 = vector.extract_strided_slice %188 {offsets = [0, 64], sizes = [8, 32], strides = [1, 1]} : vector<8x128xf32> to vector<8x32xf32>
    %202 = math.tanh %201 : vector<8x32xf32>
    %203 = vector.extract_strided_slice %188 {offsets = [0, 96], sizes = [8, 32], strides = [1, 1]} : vector<8x128xf32> to vector<8x32xf32>
    %204 = arith.negf %203 : vector<8x32xf32>
    %205 = math.exp %204 : vector<8x32xf32>
    %cst_60 = arith.constant 1.000000e+00 : f32
    %206 = vector.broadcast %cst_60 : f32 to vector<8x32xf32>
    %207 = arith.addf %206, %205 : vector<8x32xf32>
    %208 = arith.divf %206, %207 : vector<8x32xf32>
    %209 = arith.mulf %200, %182 : vector<8x32xf32>
    %210 = arith.mulf %194, %202 : vector<8x32xf32>
    %211 = arith.addf %209, %210 : vector<8x32xf32>
    %212 = math.tanh %211 : vector<8x32xf32>
    %213 = arith.mulf %208, %212 : vector<8x32xf32>
    %c48_61 = arith.constant 48 : index
    %c0_62 = arith.constant 0 : index
    %214 = vector.load %arg6[%c48_61, %c0_62] : memref<64x32xf32, #tpu.memory_space<vmem>>, vector<8x32xf32>
    tpu.vector_store %arg6[%c48_61, %c0_62], %213 {strides = array<i32>} : memref<64x32xf32, #tpu.memory_space<vmem>>, vector<8x32xf32>,
    %c56 = arith.constant 56 : index
    %c0_63 = arith.constant 0 : index
    %215 = vector.load %arg7[%c56, %c0_63] : memref<64x128xf32, #tpu.memory_space<vmem>>, vector<8x128xf32>
    %cst_64 = arith.constant dense<0.000000e+00> : vector<8x128xf32>
    %216 = tpu.matmul %213, %9, %cst_64 {dimension_numbers = #tpu.dot_dimension_numbers<[1], [0], [0], [1], [0, 0, 1, 1], [], []>} : vector<8x32xf32>, vector<32x128xf32>, vector<8x128xf32> -> vector<8x128xf32>
    %217 = arith.addf %215, %216 : vector<8x128xf32>
    %218 = vector.extract_strided_slice %217 {offsets = [0, 0], sizes = [8, 32], strides = [1, 1]} : vector<8x128xf32> to vector<8x32xf32>
    %219 = arith.negf %218 : vector<8x32xf32>
    %220 = math.exp %219 : vector<8x32xf32>
    %cst_65 = arith.constant 1.000000e+00 : f32
    %221 = vector.broadcast %cst_65 : f32 to vector<8x32xf32>
    %222 = arith.addf %221, %220 : vector<8x32xf32>
    %223 = arith.divf %221, %222 : vector<8x32xf32>
    %224 = vector.extract_strided_slice %217 {offsets = [0, 32], sizes = [8, 32], strides = [1, 1]} : vector<8x128xf32> to vector<8x32xf32>
    %225 = arith.negf %224 : vector<8x32xf32>
    %226 = math.exp %225 : vector<8x32xf32>
    %cst_66 = arith.constant 1.000000e+00 : f32
    %227 = vector.broadcast %cst_66 : f32 to vector<8x32xf32>
    %228 = arith.addf %227, %226 : vector<8x32xf32>
    %229 = arith.divf %227, %228 : vector<8x32xf32>
    %230 = vector.extract_strided_slice %217 {offsets = [0, 64], sizes = [8, 32], strides = [1, 1]} : vector<8x128xf32> to vector<8x32xf32>
    %231 = math.tanh %230 : vector<8x32xf32>
    %232 = vector.extract_strided_slice %217 {offsets = [0, 96], sizes = [8, 32], strides = [1, 1]} : vector<8x128xf32> to vector<8x32xf32>
    %233 = arith.negf %232 : vector<8x32xf32>
    %234 = math.exp %233 : vector<8x32xf32>
    %cst_67 = arith.constant 1.000000e+00 : f32
    %235 = vector.broadcast %cst_67 : f32 to vector<8x32xf32>
    %236 = arith.addf %235, %234 : vector<8x32xf32>
    %237 = arith.divf %235, %236 : vector<8x32xf32>
    %238 = arith.mulf %229, %211 : vector<8x32xf32>
    %239 = arith.mulf %223, %231 : vector<8x32xf32>
    %240 = arith.addf %238, %239 : vector<8x32xf32>
    %241 = math.tanh %240 : vector<8x32xf32>
    %242 = arith.mulf %237, %241 : vector<8x32xf32>
    %c56_68 = arith.constant 56 : index
    %c0_69 = arith.constant 0 : index
    %243 = vector.load %arg6[%c56_68, %c0_69] : memref<64x32xf32, #tpu.memory_space<vmem>>, vector<8x32xf32>
    tpu.vector_store %arg6[%c56_68, %c0_69], %242 {strides = array<i32>} : memref<64x32xf32, #tpu.memory_space<vmem>>, vector<8x32xf32>,
    %c0_70 = arith.constant 0 : index
    %c0_71 = arith.constant 0 : index
    %244 = vector.load %arg6[%c0_70, %c0_71] : memref<64x32xf32, #tpu.memory_space<vmem>>, vector<64x32xf32>
    %c0_72 = arith.constant 0 : index
    %c0_73 = arith.constant 0 : index
    %c0_74 = arith.constant 0 : index
    %245 = vector.load %arg2[%c0_72, %c0_73, %c0_74] : memref<1x32x128xf32, #tpu.memory_space<vmem>>, vector<1x32x128xf32>
    %246 = vector.shape_cast %245 : vector<1x32x128xf32> to vector<32x128xf32>
    %cst_75 = arith.constant dense<0.000000e+00> : vector<64x128xf32>
    %247 = tpu.matmul %244, %246, %cst_75 {dimension_numbers = #tpu.dot_dimension_numbers<[1], [0], [0], [1], [0, 0, 1, 1], [], []>} : vector<64x32xf32>, vector<32x128xf32>, vector<64x128xf32> -> vector<64x128xf32>
    %c1 = arith.constant 1 : index
    %c0_76 = arith.constant 0 : index
    %c0_77 = arith.constant 0 : index
    %248 = vector.load %arg4[%c1, %c0_76, %c0_77] : memref<2x1x128xf32, #tpu.memory_space<vmem>>, vector<1x1x128xf32>
    %249 = vector.shape_cast %248 : vector<1x1x128xf32> to vector<1x128xf32>
    %250 = vector.broadcast %249 : vector<1x128xf32> to vector<64x128xf32>
    %251 = arith.addf %247, %250 : vector<64x128xf32>
    %c0_78 = arith.constant 0 : index
    %c0_79 = arith.constant 0 : index
    %252 = vector.load %arg7[%c0_78, %c0_79] : memref<64x128xf32, #tpu.memory_space<vmem>>, vector<64x128xf32>
    tpu.vector_store %arg7[%c0_78, %c0_79], %251 {strides = array<i32>} : memref<64x128xf32, #tpu.memory_space<vmem>>, vector<64x128xf32>,
    %c1_80 = arith.constant 1 : index
    %c0_81 = arith.constant 0 : index
    %c0_82 = arith.constant 0 : index
    %253 = vector.load %arg3[%c1_80, %c0_81, %c0_82] : memref<2x32x128xf32, #tpu.memory_space<vmem>>, vector<1x32x128xf32>
    %254 = vector.shape_cast %253 : vector<1x32x128xf32> to vector<32x128xf32>
    %cst_83 = arith.constant 0.000000e+00 : f32
    %255 = vector.broadcast %cst_83 : f32 to vector<8x32xf32>
    %cst_84 = arith.constant 0.000000e+00 : f32
    %256 = vector.broadcast %cst_84 : f32 to vector<8x32xf32>
    %c0_85 = arith.constant 0 : index
    %c0_86 = arith.constant 0 : index
    %257 = vector.load %arg7[%c0_85, %c0_86] : memref<64x128xf32, #tpu.memory_space<vmem>>, vector<8x128xf32>
    %cst_87 = arith.constant dense<0.000000e+00> : vector<8x128xf32>
    %258 = tpu.matmul %255, %254, %cst_87 {dimension_numbers = #tpu.dot_dimension_numbers<[1], [0], [0], [1], [0, 0, 1, 1], [], []>} : vector<8x32xf32>, vector<32x128xf32>, vector<8x128xf32> -> vector<8x128xf32>
    %259 = arith.addf %257, %258 : vector<8x128xf32>
    %260 = vector.extract_strided_slice %259 {offsets = [0, 0], sizes = [8, 32], strides = [1, 1]} : vector<8x128xf32> to vector<8x32xf32>
    %261 = arith.negf %260 : vector<8x32xf32>
    %262 = math.exp %261 : vector<8x32xf32>
    %cst_88 = arith.constant 1.000000e+00 : f32
    %263 = vector.broadcast %cst_88 : f32 to vector<8x32xf32>
    %264 = arith.addf %263, %262 : vector<8x32xf32>
    %265 = arith.divf %263, %264 : vector<8x32xf32>
    %266 = vector.extract_strided_slice %259 {offsets = [0, 32], sizes = [8, 32], strides = [1, 1]} : vector<8x128xf32> to vector<8x32xf32>
    %267 = arith.negf %266 : vector<8x32xf32>
    %268 = math.exp %267 : vector<8x32xf32>
    %cst_89 = arith.constant 1.000000e+00 : f32
    %269 = vector.broadcast %cst_89 : f32 to vector<8x32xf32>
    %270 = arith.addf %269, %268 : vector<8x32xf32>
    %271 = arith.divf %269, %270 : vector<8x32xf32>
    %272 = vector.extract_strided_slice %259 {offsets = [0, 64], sizes = [8, 32], strides = [1, 1]} : vector<8x128xf32> to vector<8x32xf32>
    %273 = math.tanh %272 : vector<8x32xf32>
    %274 = vector.extract_strided_slice %259 {offsets = [0, 96], sizes = [8, 32], strides = [1, 1]} : vector<8x128xf32> to vector<8x32xf32>
    %275 = arith.negf %274 : vector<8x32xf32>
    %276 = math.exp %275 : vector<8x32xf32>
    %cst_90 = arith.constant 1.000000e+00 : f32
    %277 = vector.broadcast %cst_90 : f32 to vector<8x32xf32>
    %278 = arith.addf %277, %276 : vector<8x32xf32>
    %279 = arith.divf %277, %278 : vector<8x32xf32>
    %280 = arith.mulf %271, %256 : vector<8x32xf32>
    %281 = arith.mulf %265, %273 : vector<8x32xf32>
    %282 = arith.addf %280, %281 : vector<8x32xf32>
    %283 = math.tanh %282 : vector<8x32xf32>
    %284 = arith.mulf %279, %283 : vector<8x32xf32>
    %c8_91 = arith.constant 8 : index
    %c0_92 = arith.constant 0 : index
    %285 = vector.load %arg7[%c8_91, %c0_92] : memref<64x128xf32, #tpu.memory_space<vmem>>, vector<8x128xf32>
    %cst_93 = arith.constant dense<0.000000e+00> : vector<8x128xf32>
    %286 = tpu.matmul %284, %254, %cst_93 {dimension_numbers = #tpu.dot_dimension_numbers<[1], [0], [0], [1], [0, 0, 1, 1], [], []>} : vector<8x32xf32>, vector<32x128xf32>, vector<8x128xf32> -> vector<8x128xf32>
    %287 = arith.addf %285, %286 : vector<8x128xf32>
    %288 = vector.extract_strided_slice %287 {offsets = [0, 0], sizes = [8, 32], strides = [1, 1]} : vector<8x128xf32> to vector<8x32xf32>
    %289 = arith.negf %288 : vector<8x32xf32>
    %290 = math.exp %289 : vector<8x32xf32>
    %cst_94 = arith.constant 1.000000e+00 : f32
    %291 = vector.broadcast %cst_94 : f32 to vector<8x32xf32>
    %292 = arith.addf %291, %290 : vector<8x32xf32>
    %293 = arith.divf %291, %292 : vector<8x32xf32>
    %294 = vector.extract_strided_slice %287 {offsets = [0, 32], sizes = [8, 32], strides = [1, 1]} : vector<8x128xf32> to vector<8x32xf32>
    %295 = arith.negf %294 : vector<8x32xf32>
    %296 = math.exp %295 : vector<8x32xf32>
    %cst_95 = arith.constant 1.000000e+00 : f32
    %297 = vector.broadcast %cst_95 : f32 to vector<8x32xf32>
    %298 = arith.addf %297, %296 : vector<8x32xf32>
    %299 = arith.divf %297, %298 : vector<8x32xf32>
    %300 = vector.extract_strided_slice %287 {offsets = [0, 64], sizes = [8, 32], strides = [1, 1]} : vector<8x128xf32> to vector<8x32xf32>
    %301 = math.tanh %300 : vector<8x32xf32>
    %302 = vector.extract_strided_slice %287 {offsets = [0, 96], sizes = [8, 32], strides = [1, 1]} : vector<8x128xf32> to vector<8x32xf32>
    %303 = arith.negf %302 : vector<8x32xf32>
    %304 = math.exp %303 : vector<8x32xf32>
    %cst_96 = arith.constant 1.000000e+00 : f32
    %305 = vector.broadcast %cst_96 : f32 to vector<8x32xf32>
    %306 = arith.addf %305, %304 : vector<8x32xf32>
    %307 = arith.divf %305, %306 : vector<8x32xf32>
    %308 = arith.mulf %299, %282 : vector<8x32xf32>
    %309 = arith.mulf %293, %301 : vector<8x32xf32>
    %310 = arith.addf %308, %309 : vector<8x32xf32>
    %311 = math.tanh %310 : vector<8x32xf32>
    %312 = arith.mulf %307, %311 : vector<8x32xf32>
    %c16_97 = arith.constant 16 : index
    %c0_98 = arith.constant 0 : index
    %313 = vector.load %arg7[%c16_97, %c0_98] : memref<64x128xf32, #tpu.memory_space<vmem>>, vector<8x128xf32>
    %cst_99 = arith.constant dense<0.000000e+00> : vector<8x128xf32>
    %314 = tpu.matmul %312, %254, %cst_99 {dimension_numbers = #tpu.dot_dimension_numbers<[1], [0], [0], [1], [0, 0, 1, 1], [], []>} : vector<8x32xf32>, vector<32x128xf32>, vector<8x128xf32> -> vector<8x128xf32>
    %315 = arith.addf %313, %314 : vector<8x128xf32>
    %316 = vector.extract_strided_slice %315 {offsets = [0, 0], sizes = [8, 32], strides = [1, 1]} : vector<8x128xf32> to vector<8x32xf32>
    %317 = arith.negf %316 : vector<8x32xf32>
    %318 = math.exp %317 : vector<8x32xf32>
    %cst_100 = arith.constant 1.000000e+00 : f32
    %319 = vector.broadcast %cst_100 : f32 to vector<8x32xf32>
    %320 = arith.addf %319, %318 : vector<8x32xf32>
    %321 = arith.divf %319, %320 : vector<8x32xf32>
    %322 = vector.extract_strided_slice %315 {offsets = [0, 32], sizes = [8, 32], strides = [1, 1]} : vector<8x128xf32> to vector<8x32xf32>
    %323 = arith.negf %322 : vector<8x32xf32>
    %324 = math.exp %323 : vector<8x32xf32>
    %cst_101 = arith.constant 1.000000e+00 : f32
    %325 = vector.broadcast %cst_101 : f32 to vector<8x32xf32>
    %326 = arith.addf %325, %324 : vector<8x32xf32>
    %327 = arith.divf %325, %326 : vector<8x32xf32>
    %328 = vector.extract_strided_slice %315 {offsets = [0, 64], sizes = [8, 32], strides = [1, 1]} : vector<8x128xf32> to vector<8x32xf32>
    %329 = math.tanh %328 : vector<8x32xf32>
    %330 = vector.extract_strided_slice %315 {offsets = [0, 96], sizes = [8, 32], strides = [1, 1]} : vector<8x128xf32> to vector<8x32xf32>
    %331 = arith.negf %330 : vector<8x32xf32>
    %332 = math.exp %331 : vector<8x32xf32>
    %cst_102 = arith.constant 1.000000e+00 : f32
    %333 = vector.broadcast %cst_102 : f32 to vector<8x32xf32>
    %334 = arith.addf %333, %332 : vector<8x32xf32>
    %335 = arith.divf %333, %334 : vector<8x32xf32>
    %336 = arith.mulf %327, %310 : vector<8x32xf32>
    %337 = arith.mulf %321, %329 : vector<8x32xf32>
    %338 = arith.addf %336, %337 : vector<8x32xf32>
    %339 = math.tanh %338 : vector<8x32xf32>
    %340 = arith.mulf %335, %339 : vector<8x32xf32>
    %c24_103 = arith.constant 24 : index
    %c0_104 = arith.constant 0 : index
    %341 = vector.load %arg7[%c24_103, %c0_104] : memref<64x128xf32, #tpu.memory_space<vmem>>, vector<8x128xf32>
    %cst_105 = arith.constant dense<0.000000e+00> : vector<8x128xf32>
    %342 = tpu.matmul %340, %254, %cst_105 {dimension_numbers = #tpu.dot_dimension_numbers<[1], [0], [0], [1], [0, 0, 1, 1], [], []>} : vector<8x32xf32>, vector<32x128xf32>, vector<8x128xf32> -> vector<8x128xf32>
    %343 = arith.addf %341, %342 : vector<8x128xf32>
    %344 = vector.extract_strided_slice %343 {offsets = [0, 0], sizes = [8, 32], strides = [1, 1]} : vector<8x128xf32> to vector<8x32xf32>
    %345 = arith.negf %344 : vector<8x32xf32>
    %346 = math.exp %345 : vector<8x32xf32>
    %cst_106 = arith.constant 1.000000e+00 : f32
    %347 = vector.broadcast %cst_106 : f32 to vector<8x32xf32>
    %348 = arith.addf %347, %346 : vector<8x32xf32>
    %349 = arith.divf %347, %348 : vector<8x32xf32>
    %350 = vector.extract_strided_slice %343 {offsets = [0, 32], sizes = [8, 32], strides = [1, 1]} : vector<8x128xf32> to vector<8x32xf32>
    %351 = arith.negf %350 : vector<8x32xf32>
    %352 = math.exp %351 : vector<8x32xf32>
    %cst_107 = arith.constant 1.000000e+00 : f32
    %353 = vector.broadcast %cst_107 : f32 to vector<8x32xf32>
    %354 = arith.addf %353, %352 : vector<8x32xf32>
    %355 = arith.divf %353, %354 : vector<8x32xf32>
    %356 = vector.extract_strided_slice %343 {offsets = [0, 64], sizes = [8, 32], strides = [1, 1]} : vector<8x128xf32> to vector<8x32xf32>
    %357 = math.tanh %356 : vector<8x32xf32>
    %358 = vector.extract_strided_slice %343 {offsets = [0, 96], sizes = [8, 32], strides = [1, 1]} : vector<8x128xf32> to vector<8x32xf32>
    %359 = arith.negf %358 : vector<8x32xf32>
    %360 = math.exp %359 : vector<8x32xf32>
    %cst_108 = arith.constant 1.000000e+00 : f32
    %361 = vector.broadcast %cst_108 : f32 to vector<8x32xf32>
    %362 = arith.addf %361, %360 : vector<8x32xf32>
    %363 = arith.divf %361, %362 : vector<8x32xf32>
    %364 = arith.mulf %355, %338 : vector<8x32xf32>
    %365 = arith.mulf %349, %357 : vector<8x32xf32>
    %366 = arith.addf %364, %365 : vector<8x32xf32>
    %367 = math.tanh %366 : vector<8x32xf32>
    %368 = arith.mulf %363, %367 : vector<8x32xf32>
    %c32_109 = arith.constant 32 : index
    %c0_110 = arith.constant 0 : index
    %369 = vector.load %arg7[%c32_109, %c0_110] : memref<64x128xf32, #tpu.memory_space<vmem>>, vector<8x128xf32>
    %cst_111 = arith.constant dense<0.000000e+00> : vector<8x128xf32>
    %370 = tpu.matmul %368, %254, %cst_111 {dimension_numbers = #tpu.dot_dimension_numbers<[1], [0], [0], [1], [0, 0, 1, 1], [], []>} : vector<8x32xf32>, vector<32x128xf32>, vector<8x128xf32> -> vector<8x128xf32>
    %371 = arith.addf %369, %370 : vector<8x128xf32>
    %372 = vector.extract_strided_slice %371 {offsets = [0, 0], sizes = [8, 32], strides = [1, 1]} : vector<8x128xf32> to vector<8x32xf32>
    %373 = arith.negf %372 : vector<8x32xf32>
    %374 = math.exp %373 : vector<8x32xf32>
    %cst_112 = arith.constant 1.000000e+00 : f32
    %375 = vector.broadcast %cst_112 : f32 to vector<8x32xf32>
    %376 = arith.addf %375, %374 : vector<8x32xf32>
    %377 = arith.divf %375, %376 : vector<8x32xf32>
    %378 = vector.extract_strided_slice %371 {offsets = [0, 32], sizes = [8, 32], strides = [1, 1]} : vector<8x128xf32> to vector<8x32xf32>
    %379 = arith.negf %378 : vector<8x32xf32>
    %380 = math.exp %379 : vector<8x32xf32>
    %cst_113 = arith.constant 1.000000e+00 : f32
    %381 = vector.broadcast %cst_113 : f32 to vector<8x32xf32>
    %382 = arith.addf %381, %380 : vector<8x32xf32>
    %383 = arith.divf %381, %382 : vector<8x32xf32>
    %384 = vector.extract_strided_slice %371 {offsets = [0, 64], sizes = [8, 32], strides = [1, 1]} : vector<8x128xf32> to vector<8x32xf32>
    %385 = math.tanh %384 : vector<8x32xf32>
    %386 = vector.extract_strided_slice %371 {offsets = [0, 96], sizes = [8, 32], strides = [1, 1]} : vector<8x128xf32> to vector<8x32xf32>
    %387 = arith.negf %386 : vector<8x32xf32>
    %388 = math.exp %387 : vector<8x32xf32>
    %cst_114 = arith.constant 1.000000e+00 : f32
    %389 = vector.broadcast %cst_114 : f32 to vector<8x32xf32>
    %390 = arith.addf %389, %388 : vector<8x32xf32>
    %391 = arith.divf %389, %390 : vector<8x32xf32>
    %392 = arith.mulf %383, %366 : vector<8x32xf32>
    %393 = arith.mulf %377, %385 : vector<8x32xf32>
    %394 = arith.addf %392, %393 : vector<8x32xf32>
    %395 = math.tanh %394 : vector<8x32xf32>
    %396 = arith.mulf %391, %395 : vector<8x32xf32>
    %c40_115 = arith.constant 40 : index
    %c0_116 = arith.constant 0 : index
    %397 = vector.load %arg7[%c40_115, %c0_116] : memref<64x128xf32, #tpu.memory_space<vmem>>, vector<8x128xf32>
    %cst_117 = arith.constant dense<0.000000e+00> : vector<8x128xf32>
    %398 = tpu.matmul %396, %254, %cst_117 {dimension_numbers = #tpu.dot_dimension_numbers<[1], [0], [0], [1], [0, 0, 1, 1], [], []>} : vector<8x32xf32>, vector<32x128xf32>, vector<8x128xf32> -> vector<8x128xf32>
    %399 = arith.addf %397, %398 : vector<8x128xf32>
    %400 = vector.extract_strided_slice %399 {offsets = [0, 0], sizes = [8, 32], strides = [1, 1]} : vector<8x128xf32> to vector<8x32xf32>
    %401 = arith.negf %400 : vector<8x32xf32>
    %402 = math.exp %401 : vector<8x32xf32>
    %cst_118 = arith.constant 1.000000e+00 : f32
    %403 = vector.broadcast %cst_118 : f32 to vector<8x32xf32>
    %404 = arith.addf %403, %402 : vector<8x32xf32>
    %405 = arith.divf %403, %404 : vector<8x32xf32>
    %406 = vector.extract_strided_slice %399 {offsets = [0, 32], sizes = [8, 32], strides = [1, 1]} : vector<8x128xf32> to vector<8x32xf32>
    %407 = arith.negf %406 : vector<8x32xf32>
    %408 = math.exp %407 : vector<8x32xf32>
    %cst_119 = arith.constant 1.000000e+00 : f32
    %409 = vector.broadcast %cst_119 : f32 to vector<8x32xf32>
    %410 = arith.addf %409, %408 : vector<8x32xf32>
    %411 = arith.divf %409, %410 : vector<8x32xf32>
    %412 = vector.extract_strided_slice %399 {offsets = [0, 64], sizes = [8, 32], strides = [1, 1]} : vector<8x128xf32> to vector<8x32xf32>
    %413 = math.tanh %412 : vector<8x32xf32>
    %414 = vector.extract_strided_slice %399 {offsets = [0, 96], sizes = [8, 32], strides = [1, 1]} : vector<8x128xf32> to vector<8x32xf32>
    %415 = arith.negf %414 : vector<8x32xf32>
    %416 = math.exp %415 : vector<8x32xf32>
    %cst_120 = arith.constant 1.000000e+00 : f32
    %417 = vector.broadcast %cst_120 : f32 to vector<8x32xf32>
    %418 = arith.addf %417, %416 : vector<8x32xf32>
    %419 = arith.divf %417, %418 : vector<8x32xf32>
    %420 = arith.mulf %411, %394 : vector<8x32xf32>
    %421 = arith.mulf %405, %413 : vector<8x32xf32>
    %422 = arith.addf %420, %421 : vector<8x32xf32>
    %423 = math.tanh %422 : vector<8x32xf32>
    %424 = arith.mulf %419, %423 : vector<8x32xf32>
    %c48_121 = arith.constant 48 : index
    %c0_122 = arith.constant 0 : index
    %425 = vector.load %arg7[%c48_121, %c0_122] : memref<64x128xf32, #tpu.memory_space<vmem>>, vector<8x128xf32>
    %cst_123 = arith.constant dense<0.000000e+00> : vector<8x128xf32>
    %426 = tpu.matmul %424, %254, %cst_123 {dimension_numbers = #tpu.dot_dimension_numbers<[1], [0], [0], [1], [0, 0, 1, 1], [], []>} : vector<8x32xf32>, vector<32x128xf32>, vector<8x128xf32> -> vector<8x128xf32>
    %427 = arith.addf %425, %426 : vector<8x128xf32>
    %428 = vector.extract_strided_slice %427 {offsets = [0, 0], sizes = [8, 32], strides = [1, 1]} : vector<8x128xf32> to vector<8x32xf32>
    %429 = arith.negf %428 : vector<8x32xf32>
    %430 = math.exp %429 : vector<8x32xf32>
    %cst_124 = arith.constant 1.000000e+00 : f32
    %431 = vector.broadcast %cst_124 : f32 to vector<8x32xf32>
    %432 = arith.addf %431, %430 : vector<8x32xf32>
    %433 = arith.divf %431, %432 : vector<8x32xf32>
    %434 = vector.extract_strided_slice %427 {offsets = [0, 32], sizes = [8, 32], strides = [1, 1]} : vector<8x128xf32> to vector<8x32xf32>
    %435 = arith.negf %434 : vector<8x32xf32>
    %436 = math.exp %435 : vector<8x32xf32>
    %cst_125 = arith.constant 1.000000e+00 : f32
    %437 = vector.broadcast %cst_125 : f32 to vector<8x32xf32>
    %438 = arith.addf %437, %436 : vector<8x32xf32>
    %439 = arith.divf %437, %438 : vector<8x32xf32>
    %440 = vector.extract_strided_slice %427 {offsets = [0, 64], sizes = [8, 32], strides = [1, 1]} : vector<8x128xf32> to vector<8x32xf32>
    %441 = math.tanh %440 : vector<8x32xf32>
    %442 = vector.extract_strided_slice %427 {offsets = [0, 96], sizes = [8, 32], strides = [1, 1]} : vector<8x128xf32> to vector<8x32xf32>
    %443 = arith.negf %442 : vector<8x32xf32>
    %444 = math.exp %443 : vector<8x32xf32>
    %cst_126 = arith.constant 1.000000e+00 : f32
    %445 = vector.broadcast %cst_126 : f32 to vector<8x32xf32>
    %446 = arith.addf %445, %444 : vector<8x32xf32>
    %447 = arith.divf %445, %446 : vector<8x32xf32>
    %448 = arith.mulf %439, %422 : vector<8x32xf32>
    %449 = arith.mulf %433, %441 : vector<8x32xf32>
    %450 = arith.addf %448, %449 : vector<8x32xf32>
    %451 = math.tanh %450 : vector<8x32xf32>
    %452 = arith.mulf %447, %451 : vector<8x32xf32>
    %c56_127 = arith.constant 56 : index
    %c0_128 = arith.constant 0 : index
    %453 = vector.load %arg7[%c56_127, %c0_128] : memref<64x128xf32, #tpu.memory_space<vmem>>, vector<8x128xf32>
    %cst_129 = arith.constant dense<0.000000e+00> : vector<8x128xf32>
    %454 = tpu.matmul %452, %254, %cst_129 {dimension_numbers = #tpu.dot_dimension_numbers<[1], [0], [0], [1], [0, 0, 1, 1], [], []>} : vector<8x32xf32>, vector<32x128xf32>, vector<8x128xf32> -> vector<8x128xf32>
    %455 = arith.addf %453, %454 : vector<8x128xf32>
    %456 = vector.extract_strided_slice %455 {offsets = [0, 0], sizes = [8, 32], strides = [1, 1]} : vector<8x128xf32> to vector<8x32xf32>
    %457 = arith.negf %456 : vector<8x32xf32>
    %458 = math.exp %457 : vector<8x32xf32>
    %cst_130 = arith.constant 1.000000e+00 : f32
    %459 = vector.broadcast %cst_130 : f32 to vector<8x32xf32>
    %460 = arith.addf %459, %458 : vector<8x32xf32>
    %461 = arith.divf %459, %460 : vector<8x32xf32>
    %462 = vector.extract_strided_slice %455 {offsets = [0, 32], sizes = [8, 32], strides = [1, 1]} : vector<8x128xf32> to vector<8x32xf32>
    %463 = arith.negf %462 : vector<8x32xf32>
    %464 = math.exp %463 : vector<8x32xf32>
    %cst_131 = arith.constant 1.000000e+00 : f32
    %465 = vector.broadcast %cst_131 : f32 to vector<8x32xf32>
    %466 = arith.addf %465, %464 : vector<8x32xf32>
    %467 = arith.divf %465, %466 : vector<8x32xf32>
    %468 = vector.extract_strided_slice %455 {offsets = [0, 64], sizes = [8, 32], strides = [1, 1]} : vector<8x128xf32> to vector<8x32xf32>
    %469 = math.tanh %468 : vector<8x32xf32>
    %470 = vector.extract_strided_slice %455 {offsets = [0, 96], sizes = [8, 32], strides = [1, 1]} : vector<8x128xf32> to vector<8x32xf32>
    %471 = arith.negf %470 : vector<8x32xf32>
    %472 = math.exp %471 : vector<8x32xf32>
    %cst_132 = arith.constant 1.000000e+00 : f32
    %473 = vector.broadcast %cst_132 : f32 to vector<8x32xf32>
    %474 = arith.addf %473, %472 : vector<8x32xf32>
    %475 = arith.divf %473, %474 : vector<8x32xf32>
    %476 = arith.mulf %467, %450 : vector<8x32xf32>
    %477 = arith.mulf %461, %469 : vector<8x32xf32>
    %478 = arith.addf %476, %477 : vector<8x32xf32>
    %479 = math.tanh %478 : vector<8x32xf32>
    %480 = arith.mulf %475, %479 : vector<8x32xf32>
    %c0_133 = arith.constant 0 : index
    %c0_134 = arith.constant 0 : index
    %481 = vector.load %arg5[%c0_133, %c0_134] : memref<8x32xf32, #tpu.memory_space<vmem>>, vector<8x32xf32>
    tpu.vector_store %arg5[%c0_133, %c0_134], %480 {strides = array<i32>} : memref<8x32xf32, #tpu.memory_space<vmem>>, vector<8x32xf32>,
    return
  }
}

</mosaic_0001>

<bundles_post_ra>
// kernel: lstm_forward.1
= control target key start
LH: loop header
LB: loop body
LE: loop exit
PB: predicated region body
PF: predicated region fallthrough
CT: control target
= control target key end

     0   :  { %v2638_v3 = vmov 0.0|0.0   ;;  %vm2639_vm0 = vmmov 0   ;;  %v2640_v4 = vmov 0.0   ;;  %s2641_s13 = smov 64   ;;  %s2642_s14 = smov 32   ;;  %vm169_vm1 = vcmask 261120   ;;  %s3039_s1 = inlined_call_operand.vmem [shape: f32[128,128], index: 1, kind: input, shape index: {}]   ;;  %s3040_s3 = inlined_call_operand.vmem [shape: f32[2,32,128], index: 3, kind: input, shape index: {}]   ;;  %s3041_s0 = inlined_call_operand.vmem [shape: f32[64,128], index: 0, kind: input, shape index: {}]   ;;  %s3042_s4 = inlined_call_operand.vmem [shape: f32[2,1,128], index: 4, kind: input, shape index: {}]   ;;  %s3043_s2 = inlined_call_operand.vmem [shape: f32[1,32,128], index: 2, kind: input, shape index: {}]   ;;  %s3044_s5 = inlined_call_operand.vmem [shape: f32[8,32], index: 5, kind: output, shape index: {}]  }
   0x1   :  { %v28_v0 = vld [vmem:[%s3039_s1] sm:$0xff]  ;;  %v29_v1 = vld [vmem:[%s3039_s1 + $0x8] sm:$0xff]  ;;  %v30_v2 = vld [vmem:[%s3039_s1 + $0x10] sm:$0xff]  ;;  %2401 = vmatprep.subr.bf16.mxu1 %v2638_v3  ;;  %2181 = vmatprep.mubr.msk.f32.mxu1 %vm2639_vm0, %v2640_v4 }
   0x2   :  { %v2369_v5 = vpack.c.bf16 %v29_v1, %v28_v0  ;;  %v31_v6 = vld [vmem:[%s3039_s1 + $0x18] sm:$0xff]  ;;  %v32_v8 = vld [vmem:[%s3039_s1 + $0x20] sm:$0xff]  ;;  %v33_v9 = vld [vmem:[%s3039_s1 + $0x28] sm:$0xff] }
   0x3   :  { %v2373_v7 = vpack.c.bf16 %v31_v6, %v30_v2  ;;  %v164_v10 = vld [vmem:[%s3040_s3] sm:$0xff]  ;;  %v2377_v11 = vpack.c.bf16 %v33_v9, %v32_v8  ;;  %v34_v12 = vld [vmem:[%s3039_s1 + $0x30] sm:$0xff]  ;;  %v35_v13 = vld [vmem:[%s3039_s1 + $0x38] sm:$0xff] }
   0x4   :  { %2370 = vmatprep.subr.bf16.mxu0 %v2369_v5  ;;  %v165_v14 = vld [vmem:[%s3040_s3 + $0x8] sm:$0xff]  ;;  %v20_v16 = vld [vmem:[%s3041_s0] sm:$0xff]  ;;  %v166_v17 = vld [vmem:[%s3040_s3 + $0x10] sm:$0xff]  ;;  %v2381_v20 = vpack.c.bf16 %v35_v13, %v34_v12 }
   0x5   :  { %2372 = vmatpush3.bf16.msra.mxu0 %v2369_v5  ;;  %v2706_v15 = vpack.c.bf16 %v165_v14, %v164_v10  ;;  %v167_v18 = vld [vmem:[%s3040_s3 + $0x18] sm:$0xff]  ;;  %2161 = vmatprep.mubr.f32.mxu0 %v20_v16  ;;  %v36_v21 = vld [vmem:[%s3039_s1 + $0x40] sm:$0xff]  ;;  %v37_v22 = vld [vmem:[%s3039_s1 + $0x48] sm:$0xff] }
   0x6   :  { %2374 = vmatprep.subr.bf16.mxu0 %v2373_v7  ;;  %v2718_v19 = vpack.c.bf16 %v167_v18, %v166_v17  ;;  %v2385_v23 = vpack.c.bf16 %v37_v22, %v36_v21  ;;  %v38_v24 = vld [vmem:[%s3039_s1 + $0x50] sm:$0xff]  ;;  %v39_v25 = vld [vmem:[%s3039_s1 + $0x58] sm:$0xff]  ;;  %v40_v27 = vld [vmem:[%s3039_s1 + $0x60] sm:$0xff] }
   0x7   :  { %2403 = vmatpush3.bf16.msra.mxu1 %v2706_v15  ;;  %v2389_v26 = vpack.c.bf16 %v39_v25, %v38_v24  ;;  %v41_v28 = vld [vmem:[%s3039_s1 + $0x68] sm:$0xff]  ;;  %v42_v30 = vld [vmem:[%s3039_s1 + $0x70] sm:$0xff]  ;;  %v43_v31 = vld [vmem:[%s3039_s1 + $0x78] sm:$0xff] }
   0x8   :  { %2404 = vmatprep.subr.bf16.mxu1 %v2638_v3  ;;  %v2393_v29 = vpack.c.bf16 %v41_v28, %v40_v27  ;;  %v2397_v32 = vpack.c.bf16 %v43_v31, %v42_v30  ;;  %v21_v33 = vld [vmem:[%s3041_s0 + $0x8] sm:$0xff]  ;;  %v2765_v36 = vld [vmem:[%s3042_s4] ss:$0 sm:$0xff]  ;;  %v23_v8 = vld [vmem:[%s3041_s0 + $0x18] sm:$0xff] }
   0x9   :  { %2376 = vmatpush3.bf16.msra.mxu0 %v2373_v7  ;;  %v22_v7 = vld [vmem:[%s3041_s0 + $0x10] sm:$0xff] }
   0xa   :  { %2378 = vmatprep.subr.bf16.mxu0 %v2377_v11 }
   0xb   :  { %2406 = vmatpush3.bf16.msra.mxu1 %v2718_v19 }
   0xc   :  { %2407 = vmatprep.subr.bf16.mxu1 %v2638_v3 }
   0xd   :  { %2380 = vmatpush3.bf16.msra.mxu0 %v2377_v11 }
   0xe   :  { %2382 = vmatprep.subr.bf16.mxu0 %v2381_v20  ;;  %2182 = vmatmul.mubr.f32.vlgmr.msra.gmra.mrb[0].mxu1 %v2640_v4 }
   0xf   :  { %2409 = vmatpush3.bf16.msra.mxu1 %v2706_v15  ;;  %2192 = vmatprep.mubr.msk.f32.mxu1 %vm2639_vm0, %v2640_v4 }
  0x10   :  { %2410 = vmatprep.subr.bf16.mxu1 %v2638_v3 }
  0x11   :  { %2384 = vmatpush3.bf16.msra.mxu0 %v2381_v20 }
  0x12   :  { %2386 = vmatprep.subr.bf16.mxu0 %v2385_v23 }
  0x13   :  { %2412 = vmatpush3.bf16.msra.mxu1 %v2718_v19 }
  0x14   :  { %2413 = vmatprep.subr.bf16.mxu1 %v2638_v3 }
  0x15   :  { %2388 = vmatpush3.bf16.msra.mxu0 %v2385_v23 }
  0x16   :  { %2390 = vmatprep.subr.bf16.mxu0 %v2389_v26 }
  0x19   :  { %2392 = vmatpush3.bf16.msra.mxu0 %v2389_v26 }
  0x1a   :  { %2394 = vmatprep.subr.bf16.mxu0 %v2393_v29 }
  0x1d   :  { %2396 = vmatpush3.bf16.msra.mxu0 %v2393_v29 }
  0x1e   :  { %2398 = vmatprep.subr.bf16.mxu0 %v2397_v32 }
  0x21   :  { %2400 = vmatpush3.bf16.msra.mxu0 %v2397_v32 }
  0x22   :  { %2431 = vmatprep.subr.bf16.mxu0 %v2638_v3 }
  0x24   :  { %2162 = vmatmul.mubr.f32.vlgmr.msra.gmra.mrb[0].mxu0 %v21_v33 }
  0x25   :  { %2433 = vmatpush3.bf16.msra.mxu0 %v2706_v15  ;;  %2164 = vmatprep.mubr.f32.mxu0 %v22_v7 }
  0x26   :  { %2434 = vmatprep.subr.bf16.mxu0 %v2638_v3 }
  0x28   :  { %2165 = vmatmul.mubr.f32.gmra.mrb[2].mxu0 %v23_v8 }
  0x29   :  { %2436 = vmatpush3.bf16.msra.mxu0 %v2718_v19 }
  0x2a   :  { %2443 = vmatprep.subr.bf16.mxu0 %v2638_v3 }
  0xe1   :  { %v239_v34 = vpop.f32.mrb[0].mxu1 }
  0xe2   :  { %v2183_v35 = vpop.f32.mrb[1].mxu1 }
  0xf7   :  { %v2163_v37 = vpop.f32.mrb[0].mxu0 }
  0xf8   :  { %v117_v38 = vpop.f32.mrb[1].mxu0  ;;  %v123_v55 = vadd.f32 %v2163_v37, %v2765_v36 }
  0xf9   :  { %v118_v39 = vadd.f32 %v2765_v36, %v117_v38 }
  0xfb   :  { %v243_v40 = vadd.f32 %v239_v34, %v118_v39  ;;  %v2166_v12 = vpop.f32.mrb[2].mxu0 }
  0xfc   :  { %v127_v13 = vpop.f32.mrb[3].mxu0  ;;  %v133_v35 = vadd.f32 %v2166_v12, %v2765_v36 }
  0xfd   :  { %2510 = vtanh.f32 %v243_v40  ;;  %v1969_v42 = vmul.f32 -1.442695, %v243_v40  ;;  %v128_v16 = vadd.f32 %v2765_v36, %v127_v13 }
  0xff   :  { %2512 = vpow2.f32 %v1969_v42 }
 0x107   :  { %v2511_v41 = vpop.eup %2510 }
 0x108   :  { %253 = vrot.lane.b32.xlu0 %v2511_v41, %s2641_s13 }
 0x109   :  { %v2513_v43 = vpop.eup %2512 }
 0x10a   :  { %v247_v44 = vadd.f32 1.0, %v2513_v43 }
 0x10c   :  { %2514 = vrcp.f32 %v247_v44 }
 0x116   :  { %v2515_v45 = vpop.eup %2514 }
 0x117   :  { %v251_v48 = vmul.f32 0.0, %v2515_v45 }
 0x17a   :  { %v254_v46 = vpop.permute.xlu0 %253 }
 0x17b   :  { %v256_v47 = vmul.f32 %v2515_v45, %v254_v46 }
 0x17d   :  { %258 = vrot.lane.b32.xlu0 %v256_v47, %s2642_s14 }
 0x1ef   :  { %v259_v49 = vpop.permute.xlu0 %258 }
 0x1f0   :  { %v261_v50 = vadd.f32 %v259_v49, %v251_v48 }
 0x1f2   :  { %2516 = vtanh.f32 %v261_v50 }
 0x1fc   :  { %v2517_v51 = vpop.eup %2516 }
 0x1fd   :  { %264 = vrot.lane.b32.xlu1 %v2517_v51, %s2641_s13  ;;  %v25_v51 = vld [vmem:[%s3041_s0 + $0x28] sm:$0xff] }
 0x26f   :  { %v265_v52 = vpop.permute.xlu1 %264 }
 0x270   :  { %v267_v53 = vmul.f32 %v2515_v45, %v265_v52 }
 0x272   :  { %269 = vrot.lane.b32.xlu1 %v267_v53, %s2642_s14 }
 0x2e4   :  { %v270_v54 = vpop.permute.xlu1 %269 }
 0x2e5   :  { %272 = vst.msk [vmem:[#allocation2] sm:$0xff] %vm169_vm1, %v270_v54  ;;  %2193 = vmatmul.mubr.msk.f32.vlgmr.msra.gmra.mrb[2].mxu1 %vm169_vm1, %v270_v54 }
 0x2e6   :  { %2415 = vmatpush3.bf16.msra.mxu1 %v2706_v15  ;;  %2203 = vmatprep.mubr.msk.f32.mxu1 %vm2639_vm0, %v2640_v4 }
 0x2e7   :  { %2416 = vmatprep.subr.bf16.mxu1 %v2638_v3 }
 0x2ea   :  { %2418 = vmatpush3.bf16.msra.mxu1 %v2718_v19 }
 0x2eb   :  { %2419 = vmatprep.subr.bf16.mxu1 %v2638_v3 }
 0x3b8   :  { %v342_v56 = vpop.f32.mrb[2].mxu1 }
 0x3b9   :  { %v346_v57 = vadd.f32 %v342_v56, %v123_v55  ;;  %v2194_v58 = vpop.f32.mrb[3].mxu1 }
 0x3bb   :  { %2518 = vtanh.f32 %v346_v57  ;;  %v1971_v60 = vmul.f32 -1.442695, %v346_v57 }
 0x3bd   :  { %2520 = vpow2.f32 %v1971_v60 }
 0x3c5   :  { %v2519_v59 = vpop.eup %2518 }
 0x3c6   :  { %356 = vrot.lane.b32.xlu0 %v2519_v59, %s2641_s13 }
 0x3c7   :  { %v2521_v61 = vpop.eup %2520 }
 0x3c8   :  { %v350_v62 = vadd.f32 1.0, %v2521_v61 }
 0x3ca   :  { %2522 = vrcp.f32 %v350_v62 }
 0x3d4   :  { %v2523_v63 = vpop.eup %2522 }
 0x3d5   :  { %v354_v2 = vmul.f32 %v2523_v63, %v261_v50  ;;  %v24_v50 = vld [vmem:[%s3041_s0 + $0x20] sm:$0xff] }
 0x3d6   :  { %2167 = vmatprep.mubr.f32.mxu0 %v24_v50 }
 0x3d7   :  { %2168 = vmatmul.mubr.f32.gmra.mrb[4].mxu0 %v25_v51 }
 0x438   :  { %v357_v0 = vpop.permute.xlu0 %356 }
 0x439   :  { %v359_v1 = vmul.f32 %v2523_v63, %v357_v0 }
 0x43b   :  { %361 = vrot.lane.b32.xlu1 %v359_v1, %s2642_s14 }
 0x4aa   :  { %v2169_v55 = vpop.f32.mrb[4].mxu0 }
 0x4ab   :  { %v137_v56 = vpop.f32.mrb[5].mxu0 }
 0x4ac   :  { %v138_v58 = vadd.f32 %v2765_v36, %v137_v56 }
 0x4ad   :  { %v362_v5 = vpop.permute.xlu1 %361 }
 0x4ae   :  { %v364_v6 = vadd.f32 %v362_v5, %v354_v2 }
 0x4b0   :  { %2524 = vtanh.f32 %v364_v6 }
 0x4ba   :  { %v2525_v9 = vpop.eup %2524 }
 0x4bb   :  { %367 = vrot.lane.b32.xlu0 %v2525_v9, %s2641_s13 }
 0x52d   :  { %v368_v10 = vpop.permute.xlu0 %367 }
 0x52e   :  { %v370_v11 = vmul.f32 %v2523_v63, %v368_v10  ;;  %v26_v10 = vld [vmem:[%s3041_s0 + $0x30] sm:$0xff] }
 0x52f   :  { %2170 = vmatprep.mubr.f32.mxu0 %v26_v10 }
 0x530   :  { %372 = vrot.lane.b32.xlu1 %v370_v11, %s2642_s14  ;;  %v27_v11 = vld [vmem:[%s3041_s0 + $0x38] sm:$0xff] }
 0x531   :  { %2171 = vmatmul.mubr.f32.gmra.mrb[6].mxu0 %v27_v11  ;;  %v1996_v11 = vld [vmem:[%s3040_s3 + $0x30] sm:$0xff] }
 0x532   :  { %2236 = vmatprep.mubr.msk.f32.mxu0 %vm2639_vm0, %v2640_v4 }
 0x5a2   :  { %v373_v14 = vpop.permute.xlu1 %372 }
 0x5a3   :  { %375 = vst.msk [vmem:[#allocation2 + $0x8] sm:$0xff] %vm169_vm1, %v373_v14  ;;  %2204 = vmatmul.mubr.msk.f32.vlgmr.msra.gmra.mrb[4].mxu1 %vm169_vm1, %v373_v14 }
 0x5a4   :  { %2421 = vmatpush3.bf16.msra.mxu1 %v2706_v15  ;;  %2214 = vmatprep.mubr.msk.f32.mxu1 %vm2639_vm0, %v2640_v4 }
 0x5a5   :  { %2422 = vmatprep.subr.bf16.mxu1 %v2638_v3 }
 0x5a8   :  { %2424 = vmatpush3.bf16.msra.mxu1 %v2718_v19 }
 0x5a9   :  { %2425 = vmatprep.subr.bf16.mxu1 %v2638_v3 }
 0x676   :  { %v445_v17 = vpop.f32.mrb[4].mxu1 }
 0x677   :  { %v449_v18 = vadd.f32 %v445_v17, %v128_v16  ;;  %v2205_v20 = vpop.f32.mrb[5].mxu1  ;;  %v2843_v16 = vpop.f32.mrb[6].mxu0 }
 0x678   :  { %v147_v17 = vpop.f32.mrb[7].mxu0  ;;  %v143_v20 = vadd.f32 %v2169_v55, %v2765_v36 }
 0x679   :  { %2526 = vtanh.f32 %v449_v18  ;;  %v1973_v22 = vmul.f32 -1.442695, %v449_v18 }
 0x67b   :  { %2528 = vpow2.f32 %v1973_v22 }
 0x683   :  { %v2527_v21 = vpop.eup %2526 }
 0x684   :  { %459 = vrot.lane.b32.xlu0 %v2527_v21, %s2641_s13 }
 0x685   :  { %v2529_v23 = vpop.eup %2528 }
 0x686   :  { %v453_v24 = vadd.f32 1.0, %v2529_v23 }
 0x688   :  { %2530 = vrcp.f32 %v453_v24 }
 0x692   :  { %v2531_v25 = vpop.eup %2530 }
 0x693   :  { %v457_v28 = vmul.f32 %v2531_v25, %v364_v6 }
 0x6f6   :  { %v460_v26 = vpop.permute.xlu0 %459 }
 0x6f7   :  { %v462_v27 = vmul.f32 %v2531_v25, %v460_v26 }
 0x6f9   :  { %464 = vrot.lane.b32.xlu1 %v462_v27, %s2642_s14 }
 0x76b   :  { %v465_v29 = vpop.permute.xlu1 %464 }
 0x76c   :  { %v467_v30 = vadd.f32 %v465_v29, %v457_v28 }
 0x76e   :  { %2532 = vtanh.f32 %v467_v30 }
 0x778   :  { %v2533_v31 = vpop.eup %2532 }
 0x779   :  { %470 = vrot.lane.b32.xlu0 %v2533_v31, %s2641_s13 }
 0x7eb   :  { %v471_v32 = vpop.permute.xlu0 %470 }
 0x7ec   :  { %v473_v33 = vmul.f32 %v2531_v25, %v471_v32  ;;  %v1002_v32 = vld [vmem:[%s3043_s2] sm:$0xff] }
 0x7ee   :  { %475 = vrot.lane.b32.xlu1 %v473_v33, %s2642_s14  ;;  %v1003_v33 = vld [vmem:[%s3043_s2 + $0x8] sm:$0xff] }
 0x860   :  { %v476_v34 = vpop.permute.xlu1 %475 }
 0x861   :  { %478 = vst.msk [vmem:[#allocation2 + $0x10] sm:$0xff] %vm169_vm1, %v476_v34  ;;  %2215 = vmatmul.mubr.msk.f32.vlgmr.msra.gmra.mrb[6].mxu1 %vm169_vm1, %v476_v34  ;;  %v2449_v34 = vpack.c.bf16 %v1003_v33, %v1002_v32 }
 0x862   :  { %2427 = vmatpush3.bf16.msra.mxu1 %v2706_v15  ;;  %2225 = vmatprep.mubr.msk.f32.mxu1 %vm2639_vm0, %v2640_v4 }
 0x863   :  { %2428 = vmatprep.subr.bf16.mxu1 %v2638_v3 }
 0x866   :  { %2430 = vmatpush3.bf16.msra.mxu1 %v2718_v19 }
 0x867   :  { %2437 = vmatprep.subr.bf16.mxu1 %v2638_v3 }
 0x934   :  { %v548_v37 = vpop.f32.mrb[6].mxu1 }
 0x935   :  { %v552_v38 = vadd.f32 %v548_v37, %v133_v35  ;;  %v2216_v39 = vpop.f32.mrb[7].mxu1 }
 0x936   :  { %v1004_v39 = vld [vmem:[%s3043_s2 + $0x10] sm:$0xff] }
 0x937   :  { %2534 = vtanh.f32 %v552_v38  ;;  %v1975_v41 = vmul.f32 -1.442695, %v552_v38 }
 0x939   :  { %2536 = vpow2.f32 %v1975_v41 }
 0x941   :  { %v2535_v40 = vpop.eup %2534 }
 0x942   :  { %562 = vrot.lane.b32.xlu0 %v2535_v40, %s2641_s13  ;;  %v1005_v40 = vld [vmem:[%s3043_s2 + $0x18] sm:$0xff] }
 0x943   :  { %v2537_v42 = vpop.eup %2536  ;;  %v2453_v41 = vpack.c.bf16 %v1005_v40, %v1004_v39 }
 0x944   :  { %v556_v43 = vadd.f32 1.0, %v2537_v42 }
 0x946   :  { %2538 = vrcp.f32 %v556_v43  ;;  %v994_v43 = vld [vmem:[#allocation2] sm:$0xff] }
 0x950   :  { %v2539_v44 = vpop.eup %2538 }
 0x951   :  { %v560_v47 = vmul.f32 %v2539_v44, %v467_v30 }
 0x9b4   :  { %v563_v45 = vpop.permute.xlu0 %562 }
 0x9b5   :  { %v565_v46 = vmul.f32 %v2539_v44, %v563_v45  ;;  %v996_v45 = vld [vmem:[#allocation2 + $0x10] sm:$0xff] }
 0x9b7   :  { %567 = vrot.lane.b32.xlu1 %v565_v46, %s2642_s14 }
 0xa29   :  { %v568_v48 = vpop.permute.xlu1 %567 }
 0xa2a   :  { %v570_v49 = vadd.f32 %v568_v48, %v560_v47 }
 0xa2c   :  { %2540 = vtanh.f32 %v570_v49 }
 0xa36   :  { %v2541_v52 = vpop.eup %2540 }
 0xa37   :  { %573 = vrot.lane.b32.xlu0 %v2541_v52, %s2641_s13 }
 0xaa9   :  { %v574_v53 = vpop.permute.xlu0 %573 }
 0xaaa   :  { %v576_v54 = vmul.f32 %v2539_v44, %v574_v53  ;;  %v995_v44 = vld [vmem:[#allocation2 + $0x8] sm:$0xff] }
 0xaac   :  { %578 = vrot.lane.b32.xlu1 %v576_v54, %s2642_s14 }
 0xb1e   :  { %v579_v57 = vpop.permute.xlu1 %578 }
 0xb1f   :  { %581 = vst.msk [vmem:[#allocation2 + $0x18] sm:$0xff] %vm169_vm1, %v579_v57  ;;  %2226 = vmatmul.mubr.msk.f32.vlgmr.msra.gmra.mrb[8].mxu1 %vm169_vm1, %v579_v57 }
 0xb20   :  { %2439 = vmatpush3.bf16.msra.mxu1 %v2706_v15  ;;  %2247 = vmatprep.mubr.msk.f32.mxu1 %vm2639_vm0, %v2640_v4 }
 0xb21   :  { %2440 = vmatprep.subr.bf16.mxu1 %v2638_v3 }
 0xb24   :  { %2442 = vmatpush3.bf16.msra.mxu1 %v2718_v19 }
 0xb25   :  { %2450 = vmatprep.subr.bf16.mxu1 %v2449_v34 }
 0xb26   :  { %v997_v46 = vld [vmem:[#allocation2 + $0x18] sm:$0xff] }
 0xbf2   :  { %v651_v59 = vpop.f32.mrb[8].mxu1 }
 0xbf3   :  { %v655_v60 = vadd.f32 %v651_v59, %v138_v58  ;;  %v2227_v61 = vpop.f32.mrb[9].mxu1 }
 0xbf5   :  { %2542 = vtanh.f32 %v655_v60  ;;  %v1977_v63 = vmul.f32 -1.442695, %v655_v60 }
 0xbf7   :  { %2544 = vpow2.f32 %v1977_v63 }
 0xbff   :  { %v2543_v62 = vpop.eup %2542 }
 0xc00   :  { %665 = vrot.lane.b32.xlu0 %v2543_v62, %s2641_s13 }
 0xc01   :  { %v2545_v0 = vpop.eup %2544 }
 0xc02   :  { %v659_v1 = vadd.f32 1.0, %v2545_v0 }
 0xc04   :  { %2546 = vrcp.f32 %v659_v1 }
 0xc0e   :  { %v2547_v2 = vpop.eup %2546 }
 0xc0f   :  { %v663_v7 = vmul.f32 %v2547_v2, %v570_v49  ;;  %v148_v49 = vadd.f32 %v2765_v36, %v147_v17 }
 0xc72   :  { %v666_v5 = vpop.permute.xlu0 %665 }
 0xc73   :  { %v668_v6 = vmul.f32 %v2547_v2, %v666_v5 }
 0xc75   :  { %670 = vrot.lane.b32.xlu1 %v668_v6, %s2642_s14 }
 0xce7   :  { %v671_v8 = vpop.permute.xlu1 %670 }
 0xce8   :  { %v673_v9 = vadd.f32 %v671_v8, %v663_v7  ;;  %v1994_v8 = vld [vmem:[%s3040_s3 + $0x20] sm:$0xff] }
 0xcea   :  { %2548 = vtanh.f32 %v673_v9 }
 0xcf4   :  { %v2549_v12 = vpop.eup %2548 }
 0xcf5   :  { %676 = vrot.lane.b32.xlu0 %v2549_v12, %s2641_s13  ;;  %v1997_v12 = vld [vmem:[%s3040_s3 + $0x38] sm:$0xff] }
 0xd67   :  { %v677_v13 = vpop.permute.xlu0 %676 }
 0xd68   :  { %v679_v14 = vmul.f32 %v2547_v2, %v677_v13  ;;  %v2912_v13 = vpack.c.bf16 %v1997_v12, %v1996_v11 }
 0xd6a   :  { %681 = vrot.lane.b32.xlu1 %v679_v14, %s2642_s14 }
 0xddc   :  { %v682_v18 = vpop.permute.xlu1 %681 }
 0xddd   :  { %684 = vst.msk [vmem:[#allocation2 + $0x20] sm:$0xff] %vm169_vm1, %v682_v18  ;;  %2237 = vmatmul.mubr.msk.f32.vlgmr.msra.gmra.mrb[8].mxu0 %vm169_vm1, %v682_v18 }
 0xdde   :  { %2445 = vmatpush3.bf16.msra.mxu0 %v2706_v15  ;;  %2258 = vmatprep.mubr.msk.f32.mxu0 %vm2639_vm0, %v2640_v4 }
 0xddf   :  { %2446 = vmatprep.subr.bf16.mxu0 %v2638_v3 }
 0xde2   :  { %2448 = vmatpush3.bf16.msra.mxu0 %v2718_v19 }
 0xde3   :  { %2457 = vmatprep.subr.bf16.mxu0 %v2638_v3 }
 0xde4   :  { %v998_v47 = vld [vmem:[#allocation2 + $0x20] sm:$0xff] }
 0xeb0   :  { %v754_v21 = vpop.f32.mrb[8].mxu0 }
 0xeb1   :  { %v758_v22 = vadd.f32 %v754_v21, %v143_v20  ;;  %v2238_v23 = vpop.f32.mrb[9].mxu0  ;;  %v153_v21 = vadd.f32 %v2843_v16, %v2765_v36 }
 0xeb3   :  { %2550 = vtanh.f32 %v758_v22  ;;  %v1979_v25 = vmul.f32 -1.442695, %v758_v22 }
 0xeb5   :  { %2552 = vpow2.f32 %v1979_v25  ;;  %v2938_v25 = vld [vmem:[%s3042_s4 + $0x1] ss:$0 sm:$0xff] }
 0xebd   :  { %v2551_v24 = vpop.eup %2550 }
 0xebe   :  { %768 = vrot.lane.b32.xlu0 %v2551_v24, %s2641_s13 }
 0xebf   :  { %v2553_v15 = vpop.eup %2552 }
 0xec0   :  { %v762_v26 = vadd.f32 1.0, %v2553_v15 }
 0xec2   :  { %2554 = vrcp.f32 %v762_v26 }
 0xecc   :  { %v2555_v27 = vpop.eup %2554 }
 0xecd   :  { %v766_v19 = vmul.f32 %v2555_v27, %v673_v9  ;;  %v1995_v9 = vld [vmem:[%s3040_s3 + $0x28] sm:$0xff] }
 0xece   :  { %v2902_v10 = vpack.c.bf16 %v1995_v9, %v1994_v8 }
 0xf30   :  { %v769_v28 = vpop.permute.xlu0 %768 }
 0xf31   :  { %v771_v29 = vmul.f32 %v2555_v27, %v769_v28 }
 0xf33   :  { %773 = vrot.lane.b32.xlu1 %v771_v29, %s2642_s14 }
 0xfa5   :  { %v774_v30 = vpop.permute.xlu1 %773 }
 0xfa6   :  { %v776_v31 = vadd.f32 %v774_v30, %v766_v19 }
 0xfa8   :  { %2556 = vtanh.f32 %v776_v31 }
 0xfb2   :  { %v2557_v35 = vpop.eup %2556 }
 0xfb3   :  { %779 = vrot.lane.b32.xlu0 %v2557_v35, %s2641_s13 }
0x1025   :  { %v780_v37 = vpop.permute.xlu0 %779 }
0x1026   :  { %v782_v38 = vmul.f32 %v2555_v27, %v780_v37 }
0x1028   :  { %784 = vrot.lane.b32.xlu1 %v782_v38, %s2642_s14 }
0x109a   :  { %v785_v42 = vpop.permute.xlu1 %784 }
0x109b   :  { %787 = vst.msk [vmem:[#allocation2 + $0x28] sm:$0xff] %vm169_vm1, %v785_v42  ;;  %2248 = vmatmul.mubr.msk.f32.vlgmr.msra.gmra.mrb[10].mxu1 %vm169_vm1, %v785_v42 }
0x109c   :  { %2452 = vmatpush3.bf16.msra.mxu1 %v2449_v34  ;;  %2269 = vmatprep.mubr.msk.f32.mxu1 %vm169_vm1, %v994_v43 }
0x109d   :  { %2454 = vmatprep.subr.bf16.mxu1 %v2453_v41 }
0x10a0   :  { %2456 = vmatpush3.bf16.msra.mxu1 %v2453_v41 }
0x10a1   :  { %2469 = vmatprep.subr.bf16.mxu1 %v2638_v3 }
0x10a2   :  { %v999_v48 = vld [vmem:[#allocation2 + $0x28] sm:$0xff] }
0x10a3   :  { %2270 = vmatmul.mubr.msk.f32.vlgmr.msra.gmra.mrb[12].mxu1 %vm169_vm1, %v995_v44 }
0x10a4   :  { %2272 = vmatprep.mubr.msk.f32.mxu1 %vm169_vm1, %v996_v45  ;;  %2471 = vmatpush3.bf16.msra.mxu1 %v2902_v10 }
0x10a5   :  { %2472 = vmatprep.subr.bf16.mxu1 %v2638_v3 }
0x10a7   :  { %2273 = vmatmul.mubr.msk.f32.gmra.mrb[14].mxu1 %vm169_vm1, %v997_v46 }
0x10a8   :  { %2275 = vmatprep.mubr.msk.f32.mxu1 %vm169_vm1, %v998_v47  ;;  %2474 = vmatpush3.bf16.msra.mxu1 %v2912_v13 }
0x10a9   :  { %2481 = vmatprep.subr.bf16.mxu1 %v2638_v3 }
0x10ab   :  { %2276 = vmatmul.mubr.msk.f32.gmra.mrb[16].mxu1 %vm169_vm1, %v999_v48 }
0x116e   :  { %v857_v50 = vpop.f32.mrb[10].mxu1 }
0x116f   :  { %v861_v51 = vadd.f32 %v857_v50, %v148_v49  ;;  %v2249_v52 = vpop.f32.mrb[11].mxu1 }
0x1171   :  { %2558 = vtanh.f32 %v861_v51  ;;  %v1981_v60 = vmul.f32 -1.442695, %v861_v51 }
0x1173   :  { %2560 = vpow2.f32 %v1981_v60 }
0x1176   :  { %v2880_v53 = vpop.f32.mrb[12].mxu1 }
0x1177   :  { %v1104_v54 = vpop.f32.mrb[13].mxu1 }
0x1178   :  { %v1105_v15 = vadd.f32 %v2938_v25, %v1104_v54 }
0x117a   :  { %v2882_v55 = vpop.f32.mrb[14].mxu1 }
0x117b   :  { %v2559_v56 = vpop.eup %2558  ;;  %v2884_v57 = vpop.f32.mrb[15].mxu1 }
0x117c   :  { %871 = vrot.lane.b32.xlu0 %v2559_v56, %s2641_s13  ;;  %v1110_v56 = vadd.f32 %v2880_v53, %v2938_v25 }
0x117d   :  { %v2561_v61 = vpop.eup %2560 }
0x117e   :  { %v2887_v58 = vpop.f32.mrb[16].mxu1  ;;  %v865_v62 = vadd.f32 1.0, %v2561_v61 }
0x117f   :  { %v2889_v59 = vpop.f32.mrb[17].mxu1 }
0x1180   :  { %2562 = vrcp.f32 %v865_v62 }
0x118a   :  { %v2563_v63 = vpop.eup %2562 }
0x118b   :  { %v869_v2 = vmul.f32 %v2563_v63, %v776_v31 }
0x11ee   :  { %v872_v0 = vpop.permute.xlu0 %871 }
0x11ef   :  { %v874_v1 = vmul.f32 %v2563_v63, %v872_v0 }
0x11f1   :  { %876 = vrot.lane.b32.xlu1 %v874_v1, %s2642_s14 }
0x1263   :  { %v877_v5 = vpop.permute.xlu1 %876 }
0x1264   :  { %v2892_v6 = vadd.f32 %v877_v5, %v869_v2 }
0x1266   :  { %2564 = vtanh.f32 %v2892_v6 }
0x1270   :  { %v2565_v7 = vpop.eup %2564 }
0x1271   :  { %882 = vrot.lane.b32.xlu0 %v2565_v7, %s2641_s13 }
0x12e3   :  { %v883_v14 = vpop.permute.xlu0 %882 }
0x12e4   :  { %v885_v17 = vmul.f32 %v2563_v63, %v883_v14 }
0x12e6   :  { %887 = vrot.lane.b32.xlu1 %v885_v17, %s2642_s14 }
0x1358   :  { %v888_v18 = vpop.permute.xlu1 %887 }
0x1359   :  { %890 = vst.msk [vmem:[#allocation2 + $0x30] sm:$0xff] %vm169_vm1, %v888_v18  ;;  %2259 = vmatmul.mubr.msk.f32.vlgmr.msra.gmra.mrb[10].mxu0 %vm169_vm1, %v888_v18 }
0x135a   :  { %2459 = vmatpush3.bf16.msra.mxu0 %v2902_v10  ;;  %2289 = vmatprep.mubr.msk.f32.mxu0 %vm2639_vm0, %v2640_v4 }
0x135b   :  { %2460 = vmatprep.subr.bf16.mxu0 %v2638_v3 }
0x135e   :  { %2462 = vmatpush3.bf16.msra.mxu0 %v2912_v13 }
0x135f   :  { %2463 = vmatprep.subr.bf16.mxu0 %v2638_v3 }
0x1360   :  { %v1000_v20 = vld [vmem:[#allocation2 + $0x30] sm:$0xff] }
0x1361   :  { %2290 = vmatmul.mubr.f32.vlgmr.msra.gmra.mrb[12].mxu0 %v2640_v4  ;;  %2278 = vmatprep.mubr.msk.f32.mxu1 %vm169_vm1, %v1000_v20 }
0x1362   :  { %2465 = vmatpush3.bf16.msra.mxu0 %v2902_v10  ;;  %2300 = vmatprep.mubr.msk.f32.mxu0 %vm2639_vm0, %v2640_v4 }
0x1363   :  { %2466 = vmatprep.subr.bf16.mxu0 %v2638_v3 }
0x1366   :  { %2468 = vmatpush3.bf16.msra.mxu0 %v2912_v13 }
0x1367   :  { %2475 = vmatprep.subr.bf16.mxu0 %v2638_v3 }
0x142c   :  { %v960_v22 = vpop.f32.mrb[10].mxu0 }
0x142d   :  { %v964_v23 = vadd.f32 %v960_v22, %v153_v21  ;;  %v2260_v24 = vpop.f32.mrb[11].mxu0 }
0x142f   :  { %v1983_v39 = vmul.f32 -1.442695, %v964_v23 }
0x1434   :  { %v1223_v26 = vpop.f32.mrb[12].mxu0 }
0x1435   :  { %v1227_v27 = vadd.f32 %v1223_v26, %v1105_v15  ;;  %v2291_v28 = vpop.f32.mrb[13].mxu0 }
0x1437   :  { %2566 = vtanh.f32 %v1227_v27  ;;  %v1998_v19 = vmul.f32 -1.442695, %v1227_v27 }
0x1439   :  { %2568 = vpow2.f32 %v1998_v19 }
0x1441   :  { %v2567_v29 = vpop.eup %2566 }
0x1442   :  { %1237 = vrot.lane.b32.xlu0 %v2567_v29, %s2641_s13 }
0x1443   :  { %v2569_v36 = vpop.eup %2568 }
0x1444   :  { %v1231_v16 = vadd.f32 1.0, %v2569_v36 }
0x1446   :  { %2570 = vrcp.f32 %v1231_v16 }
0x1450   :  { %v2571_v30 = vpop.eup %2570 }
0x1451   :  { %v1235_v33 = vmul.f32 0.0, %v2571_v30 }
0x14b4   :  { %v1238_v31 = vpop.permute.xlu0 %1237 }
0x14b5   :  { %v1240_v32 = vmul.f32 %v2571_v30, %v1238_v31 }
0x14b7   :  { %1242 = vrot.lane.b32.xlu1 %v1240_v32, %s2642_s14 }
0x1529   :  { %v1243_v34 = vpop.permute.xlu1 %1242 }
0x152a   :  { %v1245_v35 = vadd.f32 %v1243_v34, %v1235_v33 }
0x152c   :  { %2572 = vtanh.f32 %v1245_v35 }
0x152d   :  { %2574 = vtanh.f32 %v964_v23  ;;  %v1115_v23 = vadd.f32 %v2938_v25, %v2884_v57 }
0x152e   :  { %2576 = vpow2.f32 %v1983_v39 }
0x1536   :  { %v2573_v37 = vpop.eup %2572 }
0x1537   :  { %1248 = vrot.lane.b32.xlu0 %v2573_v37, %s2641_s13  ;;  %v2575_v38 = vpop.eup %2574 }
0x1538   :  { %v2577_v40 = vpop.eup %2576 }
0x1539   :  { %v968_v41 = vadd.f32 1.0, %v2577_v40 }
0x153b   :  { %974 = vrot.lane.b32.xlu0 %v2575_v38, %s2641_s13  ;;  %2578 = vrcp.f32 %v968_v41  ;;  %v1120_v38 = vadd.f32 %v2882_v55, %v2938_v25 }
0x1545   :  { %v2579_v44 = vpop.eup %2578 }
0x1546   :  { %v972_v48 = vmul.f32 %v2579_v44, %v2892_v6 }
0x15a9   :  { %v1249_v42 = vpop.permute.xlu0 %1248 }
0x15aa   :  { %v1251_v43 = vmul.f32 %v2571_v30, %v1249_v42 }
0x15ac   :  { %1254 = vrot.lane.b32.xlu1 %v1251_v43, %s2642_s14 }
0x15ad   :  { %v975_v45 = vpop.permute.xlu0 %974 }
0x15ae   :  { %v977_v46 = vmul.f32 %v2579_v44, %v975_v45 }
0x15b0   :  { %979 = vrot.lane.b32.xlu0 %v977_v46, %s2642_s14 }
0x161e   :  { %v1255_v47 = vpop.permute.xlu1 %1254 }
0x161f   :  { %2301 = vmatmul.mubr.msk.f32.vlgmr.msra.gmra.mrb[14].mxu0 %vm169_vm1, %v1255_v47 }
0x1620   :  { %2477 = vmatpush3.bf16.msra.mxu0 %v2902_v10  ;;  %2322 = vmatprep.mubr.msk.f32.mxu0 %vm2639_vm0, %v2640_v4 }
0x1621   :  { %2478 = vmatprep.subr.bf16.mxu0 %v2638_v3 }
0x1622   :  { %v980_v49 = vpop.permute.xlu0 %979 }
0x1623   :  { %v982_v50 = vadd.f32 %v980_v49, %v972_v48 }
0x1624   :  { %2480 = vmatpush3.bf16.msra.mxu0 %v2912_v13 }
0x1625   :  { %2580 = vtanh.f32 %v982_v50  ;;  %2487 = vmatprep.subr.bf16.mxu0 %v2638_v3 }
0x162f   :  { %v2581_v51 = vpop.eup %2580 }
0x1630   :  { %985 = vrot.lane.b32.xlu0 %v2581_v51, %s2641_s13 }
0x16a2   :  { %v986_v52 = vpop.permute.xlu0 %985 }
0x16a3   :  { %v988_v54 = vmul.f32 %v2579_v44, %v986_v52 }
0x16a5   :  { %990 = vrot.lane.b32.xlu0 %v988_v54, %s2642_s14 }
0x16f2   :  { %v1324_v60 = vpop.f32.mrb[14].mxu0 }
0x16f3   :  { %v1328_v61 = vadd.f32 %v1324_v60, %v1110_v56  ;;  %v2302_v62 = vpop.f32.mrb[15].mxu0  ;;  %v1125_v60 = vadd.f32 %v2938_v25, %v2889_v59 }
0x16f5   :  { %2582 = vtanh.f32 %v1328_v61  ;;  %v2000_v2 = vmul.f32 -1.442695, %v1328_v61 }
0x16f7   :  { %2584 = vpow2.f32 %v2000_v2 }
0x16ff   :  { %v2583_v63 = vpop.eup %2582 }
0x1700   :  { %1338 = vrot.lane.b32.xlu1 %v2583_v63, %s2641_s13 }
0x1701   :  { %v2585_v5 = vpop.eup %2584 }
0x1702   :  { %v1332_v53 = vadd.f32 1.0, %v2585_v5 }
0x1704   :  { %2586 = vrcp.f32 %v1332_v53 }
0x170e   :  { %v2587_v6 = vpop.eup %2586 }
0x170f   :  { %v1336_v9 = vmul.f32 %v2587_v6, %v1245_v35 }
0x1717   :  { %v991_v0 = vpop.permute.xlu0 %990 }
0x1718   :  { %993 = vst.msk [vmem:[#allocation2 + $0x38] sm:$0xff] %vm169_vm1, %v991_v0 }
0x171f   :  { %v1001_v1 = vld [vmem:[#allocation2 + $0x38] sm:$0xff] }
0x1720   :  { %2279 = vmatmul.mubr.msk.f32.gmra.mrb[18].mxu1 %vm169_vm1, %v1001_v1 }
0x1721   :  { %2311 = vmatprep.mubr.msk.f32.mxu1 %vm2639_vm0, %v2640_v4 }
0x1772   :  { %v1339_v7 = vpop.permute.xlu1 %1338 }
0x1773   :  { %v1341_v8 = vmul.f32 %v2587_v6, %v1339_v7 }
0x1775   :  { %1343 = vrot.lane.b32.xlu1 %v1341_v8, %s2642_s14 }
0x17e7   :  { %v1344_v11 = vpop.permute.xlu1 %1343 }
0x17e8   :  { %v1346_v12 = vadd.f32 %v1344_v11, %v1336_v9 }
0x17ea   :  { %2588 = vtanh.f32 %v1346_v12 }
0x17f3   :  { %v2965_v14 = vpop.f32.mrb[18].mxu1 }
0x17f4   :  { %v2589_v17 = vpop.eup %2588  ;;  %v2967_v18 = vpop.f32.mrb[19].mxu1 }
0x17f5   :  { %1349 = vrot.lane.b32.xlu1 %v2589_v17, %s2641_s13 }
0x1867   :  { %v1350_v20 = vpop.permute.xlu1 %1349 }
0x1868   :  { %v1352_v21 = vmul.f32 %v2587_v6, %v1350_v20 }
0x186a   :  { %1355 = vrot.lane.b32.xlu1 %v1352_v21, %s2642_s14  ;;  %v1130_v21 = vadd.f32 %v2887_v58, %v2938_v25 }
0x18dc   :  { %v1356_v22 = vpop.permute.xlu1 %1355 }
0x18dd   :  { %2312 = vmatmul.mubr.msk.f32.vlgmr.msra.gmra.mrb[20].mxu1 %vm169_vm1, %v1356_v22 }
0x18de   :  { %2483 = vmatpush3.bf16.msra.mxu1 %v2902_v10  ;;  %2333 = vmatprep.mubr.msk.f32.mxu1 %vm2639_vm0, %v2640_v4 }
0x18df   :  { %2484 = vmatprep.subr.bf16.mxu1 %v2638_v3 }
0x18e2   :  { %2486 = vmatpush3.bf16.msra.mxu1 %v2912_v13 }
0x18e3   :  { %2493 = vmatprep.subr.bf16.mxu1 %v2638_v3 }
0x19b0   :  { %v1425_v24 = vpop.f32.mrb[20].mxu1 }
0x19b1   :  { %v1429_v15 = vadd.f32 %v1425_v24, %v1115_v23  ;;  %v2313_v26 = vpop.f32.mrb[21].mxu1 }
0x19b3   :  { %2590 = vtanh.f32 %v1429_v15  ;;  %v2002_v28 = vmul.f32 -1.442695, %v1429_v15 }
0x19b5   :  { %2592 = vpow2.f32 %v2002_v28 }
0x19bd   :  { %v2591_v27 = vpop.eup %2590 }
0x19be   :  { %1439 = vrot.lane.b32.xlu0 %v2591_v27, %s2641_s13 }
0x19bf   :  { %v2593_v29 = vpop.eup %2592 }
0x19c0   :  { %v1433_v19 = vadd.f32 1.0, %v2593_v29 }
0x19c2   :  { %2594 = vrcp.f32 %v1433_v19 }
0x19cc   :  { %v2595_v36 = vpop.eup %2594 }
0x19cd   :  { %v1437_v31 = vmul.f32 %v2595_v36, %v1346_v12 }
0x1a30   :  { %v1440_v16 = vpop.permute.xlu0 %1439 }
0x1a31   :  { %v1442_v30 = vmul.f32 %v2595_v36, %v1440_v16 }
0x1a33   :  { %1444 = vrot.lane.b32.xlu1 %v1442_v30, %s2642_s14 }
0x1aa5   :  { %v1445_v32 = vpop.permute.xlu1 %1444 }
0x1aa6   :  { %v1447_v57 = vadd.f32 %v1445_v32, %v1437_v31  ;;  %v1135_v31 = vadd.f32 %v2938_v25, %v2967_v18 }
0x1aa8   :  { %2596 = vtanh.f32 %v1447_v57 }
0x1ab2   :  { %v2597_v33 = vpop.eup %2596 }
0x1ab3   :  { %1450 = vrot.lane.b32.xlu0 %v2597_v33, %s2641_s13 }
0x1b25   :  { %v1451_v34 = vpop.permute.xlu0 %1450 }
0x1b26   :  { %v1453_v35 = vmul.f32 %v2595_v36, %v1451_v34 }
0x1b28   :  { %1456 = vrot.lane.b32.xlu1 %v1453_v35, %s2642_s14 }
0x1b9a   :  { %v1457_v37 = vpop.permute.xlu1 %1456 }
0x1b9b   :  { %2323 = vmatmul.mubr.msk.f32.vlgmr.msra.gmra.mrb[16].mxu0 %vm169_vm1, %v1457_v37 }
0x1b9c   :  { %2489 = vmatpush3.bf16.msra.mxu0 %v2902_v10  ;;  %2344 = vmatprep.mubr.msk.f32.mxu0 %vm2639_vm0, %v2640_v4 }
0x1b9d   :  { %2490 = vmatprep.subr.bf16.mxu0 %v2638_v3 }
0x1ba0   :  { %2492 = vmatpush3.bf16.msra.mxu0 %v2912_v13 }
0x1ba1   :  { %2499 = vmatprep.subr.bf16.mxu0 %v2638_v3 }
0x1c6e   :  { %v1526_v39 = vpop.f32.mrb[16].mxu0 }
0x1c6f   :  { %v1530_v40 = vadd.f32 %v1526_v39, %v1120_v38  ;;  %v2324_v41 = vpop.f32.mrb[17].mxu0 }
0x1c71   :  { %2598 = vtanh.f32 %v1530_v40  ;;  %v2004_v43 = vmul.f32 -1.442695, %v1530_v40 }
0x1c73   :  { %2600 = vpow2.f32 %v2004_v43 }
0x1c7b   :  { %v2599_v42 = vpop.eup %2598 }
0x1c7c   :  { %1540 = vrot.lane.b32.xlu0 %v2599_v42, %s2641_s13 }
0x1c7d   :  { %v2601_v44 = vpop.eup %2600 }
0x1c7e   :  { %v1534_v45 = vadd.f32 1.0, %v2601_v44 }
0x1c80   :  { %2602 = vrcp.f32 %v1534_v45 }
0x1c8a   :  { %v2603_v46 = vpop.eup %2602 }
0x1c8b   :  { %v1538_v49 = vmul.f32 %v2603_v46, %v1447_v57 }
0x1cee   :  { %v1541_v47 = vpop.permute.xlu0 %1540 }
0x1cef   :  { %v1543_v48 = vmul.f32 %v2603_v46, %v1541_v47 }
0x1cf1   :  { %1545 = vrot.lane.b32.xlu1 %v1543_v48, %s2642_s14  ;;  %v1140_v48 = vadd.f32 %v2965_v14, %v2938_v25 }
0x1d63   :  { %v1546_v50 = vpop.permute.xlu1 %1545 }
0x1d64   :  { %v1548_v55 = vadd.f32 %v1546_v50, %v1538_v49 }
0x1d66   :  { %2604 = vtanh.f32 %v1548_v55 }
0x1d70   :  { %v2605_v51 = vpop.eup %2604 }
0x1d71   :  { %1551 = vrot.lane.b32.xlu0 %v2605_v51, %s2641_s13 }
0x1de3   :  { %v1552_v52 = vpop.permute.xlu0 %1551 }
0x1de4   :  { %v1554_v54 = vmul.f32 %v2603_v46, %v1552_v52 }
0x1de6   :  { %1557 = vrot.lane.b32.xlu1 %v1554_v54, %s2642_s14 }
0x1e58   :  { %v1558_v56 = vpop.permute.xlu1 %1557 }
0x1e59   :  { %2334 = vmatmul.mubr.msk.f32.vlgmr.msra.gmra.mrb[22].mxu1 %vm169_vm1, %v1558_v56 }
0x1e5a   :  { %2495 = vmatpush3.bf16.msra.mxu1 %v2902_v10  ;;  %2355 = vmatprep.mubr.msk.f32.mxu1 %vm2639_vm0, %v2640_v4 }
0x1e5b   :  { %2496 = vmatprep.subr.bf16.mxu1 %v2638_v3 }
0x1e5e   :  { %2498 = vmatpush3.bf16.msra.mxu1 %v2912_v13 }
0x1f2c   :  { %v1627_v61 = vpop.f32.mrb[22].mxu1 }
0x1f2d   :  { %v1631_v62 = vadd.f32 %v1627_v61, %v1125_v60  ;;  %v2335_v63 = vpop.f32.mrb[23].mxu1 }
0x1f2f   :  { %2606 = vtanh.f32 %v1631_v62  ;;  %v2006_v1 = vmul.f32 -1.442695, %v1631_v62 }
0x1f31   :  { %2608 = vpow2.f32 %v2006_v1 }
0x1f39   :  { %v2607_v0 = vpop.eup %2606 }
0x1f3a   :  { %1641 = vrot.lane.b32.xlu0 %v2607_v0, %s2641_s13 }
0x1f3b   :  { %v2609_v2 = vpop.eup %2608 }
0x1f3c   :  { %v1635_v5 = vadd.f32 1.0, %v2609_v2 }
0x1f3e   :  { %2610 = vrcp.f32 %v1635_v5 }
0x1f48   :  { %v2611_v53 = vpop.eup %2610 }
0x1f49   :  { %v1639_v8 = vmul.f32 %v2611_v53, %v1548_v55 }
0x1fac   :  { %v1642_v6 = vpop.permute.xlu0 %1641 }
0x1fad   :  { %v1644_v7 = vmul.f32 %v2611_v53, %v1642_v6 }
0x1faf   :  { %1646 = vrot.lane.b32.xlu1 %v1644_v7, %s2642_s14 }
0x2021   :  { %v1647_v9 = vpop.permute.xlu1 %1646 }
0x2022   :  { %v1649_v59 = vadd.f32 %v1647_v9, %v1639_v8 }
0x2024   :  { %2612 = vtanh.f32 %v1649_v59 }
0x202e   :  { %v2613_v11 = vpop.eup %2612 }
0x202f   :  { %1652 = vrot.lane.b32.xlu0 %v2613_v11, %s2641_s13 }
0x20a1   :  { %v1653_v12 = vpop.permute.xlu0 %1652 }
0x20a2   :  { %v1655_v17 = vmul.f32 %v2611_v53, %v1653_v12 }
0x20a4   :  { %1658 = vrot.lane.b32.xlu1 %v1655_v17, %s2642_s14 }
0x2116   :  { %v1659_v20 = vpop.permute.xlu1 %1658 }
0x2117   :  { %2345 = vmatmul.mubr.msk.f32.vlgmr.msra.gmra.mrb[18].mxu0 %vm169_vm1, %v1659_v20 }
0x2118   :  { %2501 = vmatpush3.bf16.msra.mxu0 %v2902_v10  ;;  %2366 = vmatprep.mubr.msk.f32.mxu0 %vm2639_vm0, %v2640_v4 }
0x2119   :  { %2502 = vmatprep.subr.bf16.mxu0 %v2638_v3 }
0x211c   :  { %2504 = vmatpush3.bf16.msra.mxu0 %v2912_v13 }
0x21ea   :  { %v1728_v22 = vpop.f32.mrb[18].mxu0 }
0x21eb   :  { %v1732_v23 = vadd.f32 %v1728_v22, %v1130_v21  ;;  %v2346_v24 = vpop.f32.mrb[19].mxu0 }
0x21ed   :  { %2614 = vtanh.f32 %v1732_v23  ;;  %v2008_v26 = vmul.f32 -1.442695, %v1732_v23 }
0x21ef   :  { %2616 = vpow2.f32 %v2008_v26 }
0x21f7   :  { %v2615_v15 = vpop.eup %2614 }
0x21f8   :  { %1742 = vrot.lane.b32.xlu0 %v2615_v15, %s2641_s13 }
0x21f9   :  { %v2617_v10 = vpop.eup %2616 }
0x21fa   :  { %v1736_v27 = vadd.f32 1.0, %v2617_v10 }
0x21fc   :  { %2618 = vrcp.f32 %v1736_v27 }
0x2206   :  { %v2619_v4 = vpop.eup %2618 }
0x2207   :  { %v1740_v13 = vmul.f32 %v2619_v4, %v1649_v59 }
0x226a   :  { %v1743_v28 = vpop.permute.xlu0 %1742 }
0x226b   :  { %v1745_v3 = vmul.f32 %v2619_v4, %v1743_v28 }
0x226d   :  { %1747 = vrot.lane.b32.xlu1 %v1745_v3, %s2642_s14 }
0x22df   :  { %v1748_v29 = vpop.permute.xlu1 %1747 }
0x22e0   :  { %v1750_v58 = vadd.f32 %v1748_v29, %v1740_v13 }
0x22e2   :  { %2620 = vtanh.f32 %v1750_v58 }
0x22ec   :  { %v2621_v19 = vpop.eup %2620 }
0x22ed   :  { %1753 = vrot.lane.b32.xlu0 %v2621_v19, %s2641_s13 }
0x235f   :  { %v1754_v36 = vpop.permute.xlu0 %1753 }
0x2360   :  { %v1756_v16 = vmul.f32 %v2619_v4, %v1754_v36 }
0x2362   :  { %1759 = vrot.lane.b32.xlu1 %v1756_v16, %s2642_s14 }
0x23d4   :  { %v1760_v30 = vpop.permute.xlu1 %1759 }
0x23d5   :  { %2356 = vmatmul.mubr.msk.f32.vlgmr.msra.gmra.mrb[24].mxu1 %vm169_vm1, %v1760_v30 }
0x24a8   :  { %v1829_v32 = vpop.f32.mrb[24].mxu1 }
0x24a9   :  { %v1833_v57 = vadd.f32 %v1829_v32, %v1135_v31  ;;  %v2357_v33 = vpop.f32.mrb[25].mxu1 }
0x24ab   :  { %2622 = vtanh.f32 %v1833_v57  ;;  %v2010_v35 = vmul.f32 -1.442695, %v1833_v57 }
0x24ad   :  { %2624 = vpow2.f32 %v2010_v35 }
0x24b5   :  { %v2623_v34 = vpop.eup %2622 }
0x24b6   :  { %1843 = vrot.lane.b32.xlu0 %v2623_v34, %s2641_s13 }
0x24b7   :  { %v2625_v37 = vpop.eup %2624 }
0x24b8   :  { %v1837_v38 = vadd.f32 1.0, %v2625_v37 }
0x24ba   :  { %2626 = vrcp.f32 %v1837_v38 }
0x24c4   :  { %v2627_v39 = vpop.eup %2626 }
0x24c5   :  { %v1841_v42 = vmul.f32 %v2627_v39, %v1750_v58 }
0x2528   :  { %v1844_v40 = vpop.permute.xlu0 %1843 }
0x2529   :  { %v1846_v41 = vmul.f32 %v2627_v39, %v1844_v40 }
0x252b   :  { %1848 = vrot.lane.b32.xlu1 %v1846_v41, %s2642_s14 }
0x259d   :  { %v1849_v43 = vpop.permute.xlu1 %1848 }
0x259e   :  { %v1851_v18 = vadd.f32 %v1849_v43, %v1841_v42 }
0x25a0   :  { %2628 = vtanh.f32 %v1851_v18 }
0x25aa   :  { %v2629_v44 = vpop.eup %2628 }
0x25ab   :  { %1854 = vrot.lane.b32.xlu0 %v2629_v44, %s2641_s13 }
0x261d   :  { %v1855_v45 = vpop.permute.xlu0 %1854 }
0x261e   :  { %v1857_v46 = vmul.f32 %v2627_v39, %v1855_v45 }
0x2620   :  { %1860 = vrot.lane.b32.xlu1 %v1857_v46, %s2642_s14 }
0x2692   :  { %v1861_v47 = vpop.permute.xlu1 %1860 }
0x2693   :  { %2367 = vmatmul.mubr.msk.f32.vlgmr.msra.gmra.mrb[20].mxu0 %vm169_vm1, %v1861_v47 }
0x2766   :  { %v1930_v49 = vpop.f32.mrb[20].mxu0 }
0x2767   :  { %v1934_v50 = vadd.f32 %v1930_v49, %v1140_v48  ;;  %v2368_v55 = vpop.f32.mrb[21].mxu0 }
0x2769   :  { %2630 = vtanh.f32 %v1934_v50  ;;  %v2012_v52 = vmul.f32 -1.442695, %v1934_v50 }
0x276b   :  { %2632 = vpow2.f32 %v2012_v52 }
0x2773   :  { %v2631_v51 = vpop.eup %2630 }
0x2774   :  { %1944 = vrot.lane.b32.xlu0 %v2631_v51, %s2641_s13 }
0x2775   :  { %v2633_v54 = vpop.eup %2632 }
0x2776   :  { %v1938_v56 = vadd.f32 1.0, %v2633_v54 }
0x2778   :  { %2634 = vrcp.f32 %v1938_v56 }
0x2782   :  { %v2635_v60 = vpop.eup %2634 }
0x2783   :  { %v1942_v63 = vmul.f32 %v2635_v60, %v1851_v18 }
0x27e6   :  { %v1945_v61 = vpop.permute.xlu0 %1944 }
0x27e7   :  { %v1947_v62 = vmul.f32 %v2635_v60, %v1945_v61 }
0x27e9   :  { %1949 = vrot.lane.b32.xlu1 %v1947_v62, %s2642_s14 }
0x285b   :  { %v1950_v0 = vpop.permute.xlu1 %1949 }
0x285c   :  { %v1952_v25 = vadd.f32 %v1950_v0, %v1942_v63 }
0x285e   :  { %2636 = vtanh.f32 %v1952_v25 }
0x2868   :  { %v2637_v14 = vpop.eup %2636 }
0x2869   :  { %1955 = vrot.lane.b32.xlu0 %v2637_v14, %s2641_s13 }
0x28db   :  { %v1956_v1 = vpop.permute.xlu0 %1955 }
0x28dc   :  { %v1958_v2 = vmul.f32 %v2635_v60, %v1956_v1 }
0x28de   :  { %1960 = vrot.lane.b32.xlu1 %v1958_v2, %s2642_s14 }
0x2950   :  { %v1961_v5 = vpop.permute.xlu1 %1960 }
0x2951   :  { %1963 = vst.msk [vmem:[%s3044_s5] sm:$0xff] %vm169_vm1, %v1961_v5 }

</bundles_post_ra>
